<compile_context>
chip_gen: v5e
topology: v5e:2x2
jax: 0.10.0
libtpu: 0.0.40
codegen_flags: <defaults>
</compile_context>

<pallas_src>
import functools

import numpy as np

import jax
import jax.numpy as jnp
from jax import lax
from jax.experimental import pallas as pl
from jax.experimental.pallas import tpu as pltpu


# ----------------------------------------------------------------------------
# VMEM budgeting (generation aware, padding aware).
# ----------------------------------------------------------------------------


def _vmem_budgets():
    """(per-strip working-set budget, vmem_limit_bytes) from the TPU generation."""
    cap = 64 * 1024 * 1024  # conservative default (v7x per-core physical VMEM)
    try:
        info_fn = getattr(pltpu, "get_tpu_info", None)
        if info_fn is not None:
            cap = int(getattr(info_fn(), "vmem_capacity_bytes", cap)) or cap
    except Exception:  # pragma: no cover - query can fail off-device
        pass
    # v5e/v6e (128 MiB) -> limit 64 MiB, strip budget 32 MiB.
    # v7x    ( 64 MiB) -> limit 32 MiB, strip budget 16 MiB.
    vmem_limit = min(cap // 2, 64 * 1024 * 1024)
    return vmem_limit // 2, vmem_limit


def _lane(v):
    return ((v + 127) // 128) * 128


def _sub(v):
    return ((v + 7) // 8) * 8


def _strip_vmem_bytes(tile_h, *, w_out, wp, cin, cout, n_taps, halo_h,
                      in_bytes, cmp_bytes, out_bytes):
    """Padded-layout VMEM footprint of one grid step (incl. double buffers)."""
    p = tile_h * w_out
    k = n_taps * cin
    total = 0
    total += 2 * tile_h * _sub(wp) * _lane(cin) * in_bytes          # main strip block x2
    total += 2 * halo_h * _sub(wp) * _lane(cin) * in_bytes          # halo block x2
    total += 2 * _sub(cout) * _lane(k) * cmp_bytes                  # weight (resident) x2
    total += 2 * _sub(cout) * _lane(1) * 4                          # bias x2
    total += 2 * _sub(cout) * _lane(p) * out_bytes                  # output block x2
    total += (tile_h + halo_h) * _sub(wp) * _lane(cin) * cmp_bytes  # scratch strip
    total += n_taps * _sub(p) * _lane(cin) * cmp_bytes              # im2col tap patches
    total += 2 * _sub(p) * _lane(k) * cmp_bytes                     # assembled LHS (+slack)
    total += 2 * _sub(cout) * _lane(p) * 4                          # f32 acc + epilogue tmp
    return total


def _pick_tile_h(h, w, max_tile_h, budget, footprint_fn):
    """Pick a strip height.  Prefers lane-dense output tiles (tile_h*W % 128 == 0)
    and minimal padded-H waste; never falls back to a single over-VMEM strip."""
    cap = h if max_tile_h is None else max(1, min(h, max_tile_h))
    cands = list(range(8, cap + 1, 8))
    if h <= cap and h not in cands:
        cands.append(h)           # whole-image strip (covers h < 8 / odd h)
    if not cands:
        cands = [cap]
    fitting = [t for t in cands if footprint_fn(t) <= budget]
    pool = fitting if fitting else [min(cands)]   # correctness first if nothing fits

    def rank(t):
        h_pad = ((h + t - 1) // t) * t
        return ((t * w) % 128 == 0, -h_pad, t)

    tile_h = max(pool, key=rank)
    h_pad = ((h + tile_h - 1) // tile_h) * tile_h
    return tile_h, h_pad


# ----------------------------------------------------------------------------
# Kernel.
# ----------------------------------------------------------------------------


def _conv_act_kernel(x_ref, halo_ref, w_ref, b_ref, o_ref, buf_ref, *,
                     kh_size, kw_size, out_w, tile_h, cin,
                     use_act, neg_slope, fuse_kh):
    # x_ref   : (TILE_H, Wp, Cin)        main rows of this strip (reflect-padded in W)
    # halo_ref: (KH-1, Wp, Cin)          rows just below the strip
    # w_ref   : (Cout, KH*KW*Cin)        conv weight, K ordered (kh, kw, cin), compute dtype
    # b_ref   : (Cout, 1)                bias, f32
    # o_ref   : (Cout, TILE_H*W)         NCHW-flattened output strip (lane-dense)
    # buf_ref : (TILE_H+KH-1, Wp, Cin)   VMEM scratch, compute dtype
    cdt = buf_ref.dtype
    p = tile_h * out_w

    # Assemble strip + halo once (2 stores, with the single bf16 cast here);
    # every im2col tap below is a plain static slice of this buffer.
    buf_ref[:tile_h, :, :] = x_ref[...].astype(cdt)
    buf_ref[tile_h:, :, :] = halo_ref[...].astype(cdt)

    def kh_lhs(khi):
        parts = []
        for kwi in range(kw_size):
            patch = buf_ref[khi:khi + tile_h, kwi:kwi + out_w, :]   # (TILE_H, W, Cin)
            parts.append(patch.reshape(p, cin))
        return parts[0] if kw_size == 1 else jnp.concatenate(parts, axis=1)

    if fuse_kh:
        # Tiny K: one fused (Cout,K) x (P,K)^T MXU contraction.
        lhs = jnp.concatenate([kh_lhs(khi) for khi in range(kh_size)], axis=1)
        acc = lax.dot_general(w_ref[...], lhs,
                              dimension_numbers=(((1,), (1,)), ((), ())),
                              preferred_element_type=jnp.float32)    # (Cout, P) f32
    else:
        # KW*Cin >= 128: three accumulated matmuls, no 9x lane duplication.
        kseg = kw_size * cin
        acc = None
        for khi in range(kh_size):
            part = lax.dot_general(w_ref[:, khi * kseg:(khi + 1) * kseg], kh_lhs(khi),
                                   dimension_numbers=(((1,), (1,)), ((), ())),
                                   preferred_element_type=jnp.float32)
            acc = part if acc is None else acc + part

    acc = acc + b_ref[...]                                           # (Cout,1) lane-broadcast
    if use_act:
        acc = jnp.where(acc > 0, acc, neg_slope * acc)               # F.leaky_relu, f32 epilogue
    o_ref[...] = acc.astype(o_ref.dtype)                             # cast only at the store


# ----------------------------------------------------------------------------
# Wrapper.
# ----------------------------------------------------------------------------


def _conv_act_impl(x_nchw, weight, bias, *, use_act=True, negative_slope=0.01,
                   max_tile_h=None, compute_dtype=jnp.bfloat16):
    """ConvAct forward: Conv2d(reflect pad, stride 1) + bias + LeakyReLU.

    x_nchw : (N, Cin, H, W) float32
    weight : (Cout, Cin, KH, KW)   (PyTorch Conv2d layout)
    bias   : (Cout,)
    Returns (N, Cout, H, W).
    """
    cout, cin_w, ksh, ksw = weight.shape
    n, cin, h, w = x_nchw.shape
    assert cin == cin_w
    assert ksh % 2 == 1 and ksw % 2 == 1 and ksh >= 3 and ksw >= 3
    ph, pw = (ksh - 1) // 2, (ksw - 1) // 2
    halo_h = ksh - 1
    n_taps = ksh * ksw

    # Wrapper glue: NCHW -> NHWC + reflect padding (padding_mode='reflect').
    # TODO(synk): fold this transpose / reflect-pad into the kernel's DMA path.
    x_nhwc = jnp.transpose(x_nchw, (0, 2, 3, 1))
    x_pad = jnp.pad(x_nhwc, ((0, 0), (ph, ph), (pw, pw), (0, 0)), mode="reflect")
    wp = w + 2 * pw

    in_bytes = x_pad.dtype.itemsize
    cmp_bytes = np.dtype(compute_dtype).itemsize
    out_bytes = np.dtype(x_nchw.dtype).itemsize
    tile_budget, vmem_limit = _vmem_budgets()
    tile_h, h_pad = _pick_tile_h(
        h, w, max_tile_h, tile_budget,
        lambda t: _strip_vmem_bytes(t, w_out=w, wp=wp, cin=cin, cout=cout,
                                    n_taps=n_taps, halo_h=halo_h,
                                    in_bytes=in_bytes, cmp_bytes=cmp_bytes,
                                    out_bytes=out_bytes))
    n_tiles = h_pad // tile_h

    if h_pad > h:
        # H doesn't divide by tile_h: compute a few throw-away rows (sliced off
        # below) instead of collapsing to one over-VMEM strip.  The edge pad only
        # keeps every strip's DMA window in bounds; its values are never kept.
        x_pad = jnp.pad(x_pad, ((0, 0), (0, h_pad - h), (0, 0), (0, 0)), mode="edge")

    # Halo rows of strip i: padded rows [(i+1)*tile_h, (i+1)*tile_h + halo_h).
    halo_rows = jnp.concatenate(
        [x_pad[:, (i + 1) * tile_h:(i + 1) * tile_h + halo_h] for i in range(n_tiles)],
        axis=1)                                              # (N, n_tiles*halo_h, Wp, Cin)

    # Weight (Cout, Cin, KH, KW) -> (Cout, KH*KW*Cin), K ordered (kh, kw, cin),
    # cast once to the MXU compute dtype.  Bias stays f32.
    w_ok = jnp.transpose(weight, (0, 2, 3, 1)).reshape(cout, n_taps * cin)
    w_ok = w_ok.astype(compute_dtype)
    b_col = bias.astype(jnp.float32).reshape(cout, 1)

    fuse_kh = (ksw * cin) < 128   # tiny K: single fused matmul; else per-kh accumulation

    kernel = functools.partial(
        _conv_act_kernel, kh_size=ksh, kw_size=ksw, out_w=w, tile_h=tile_h,
        cin=cin, use_act=use_act, neg_slope=negative_slope, fuse_kh=fuse_kh)

    # Grid: (batch, row-strips).  On v7x both axes are 'parallel' so the two
    # TensorCores split n * n_tiles steps (keep that product >= 2 for balance).
    out_flat = pl.pallas_call(
        kernel,
        out_shape=jax.ShapeDtypeStruct((n, cout, h_pad * w), x_nchw.dtype),
        grid_spec=pltpu.PrefetchScalarGridSpec(
            num_scalar_prefetch=0,
            grid=(n, n_tiles),
            in_specs=[
                # Main rows of the strip: (1, TILE_H, Wp, Cin) per grid step.
                pl.BlockSpec((None, tile_h, wp, cin), lambda b, i: (b, i, 0, 0)),
                # Halo rows of the strip: (1, KH-1, Wp, Cin) per grid step.
                pl.BlockSpec((None, halo_h, wp, cin), lambda b, i: (b, i, 0, 0)),
                # Weight / bias: resident in VMEM across the whole grid.
                pl.BlockSpec((cout, n_taps * cin), lambda b, i: (0, 0)),
                pl.BlockSpec((cout, 1), lambda b, i: (0, 0)),
            ],
            # NCHW-flattened, lane-dense output strip: (1, Cout, TILE_H*W).
            out_specs=pl.BlockSpec((None, cout, tile_h * w), lambda b, i: (b, 0, i)),
            scratch_shapes=[pltpu.VMEM((tile_h + halo_h, wp, cin), compute_dtype)],
        ),
        compiler_params=pltpu.CompilerParams(
            dimension_semantics=("parallel", "parallel"),
            vmem_limit_bytes=vmem_limit,
        ),
    )(x_pad, halo_rows, w_ok, b_col)

    out = out_flat.reshape(n, cout, h_pad, w)
    if h_pad > h:
        out = out[:, :, :h, :]
    return out


conv_act = jax.jit(
    _conv_act_impl,
    static_argnames=("use_act", "negative_slope", "max_tile_h", "compute_dtype"))


# ----------------------------------------------------------------------------
# Pure-JAX reference + self-test.
# ----------------------------------------------------------------------------


def _reference(x_nchw, weight, bias, *, use_act=True):
    """Reflect pad + valid conv + bias + leaky_relu, all in f32."""
    cout, cin, kh, kw = weight.shape
    ph, pw = (kh - 1) // 2, (kw - 1) // 2
    x_nhwc = jnp.transpose(x_nchw, (0, 2, 3, 1))
    x_pad = jnp.pad(x_nhwc, ((0, 0), (ph, ph), (pw, pw), (0, 0)), mode="reflect")
    w_hwio = jnp.transpose(weight, (2, 3, 1, 0))
    y = lax.conv_general_dilated(
        x_pad, w_hwio, window_strides=(1, 1), padding="VALID",
        dimension_numbers=("NHWC", "HWIO", "NHWC"))
    y = y + bias.reshape(1, 1, 1, -1)
    if use_act:
        y = jnp.where(y > 0, y, 0.01 * y)
    return jnp.transpose(y, (0, 3, 1, 2))


if __name__ == "__main__":
    key = jax.random.PRNGKey(0)
    k_x, k_w, k_b, k_x2 = jax.random.split(key, 4)

    N, C_IN, C_OUT, H, W = 2, 4, 8, 16, 16
    KH, KW = 3, 3

    x = jax.random.normal(k_x, (N, C_IN, H, W), jnp.float32)
    fan_in = C_IN * KH * KW
    bound = 1.0 / (fan_in ** 0.5)
    weight = jax.random.uniform(k_w, (C_OUT, C_IN, KH, KW), jnp.float32,
                                minval=-bound, maxval=bound)
    bias = jax.random.uniform(k_b, (C_OUT,), jnp.float32,
                              minval=-bound, maxval=bound)

    ref = jax.block_until_ready(_reference(x, weight, bias, use_act=True))

    # 1) Exact-precision path (f32 MXU operands), single strip: strict check.
    out_f32 = jax.block_until_ready(
        conv_act(x, weight, bias, use_act=True, compute_dtype=jnp.float32))
    assert out_f32.shape == (N, C_OUT, H, W)
    assert jnp.allclose(out_f32, ref, atol=1e-4, rtol=1e-4), (
        f"f32 max err {jnp.max(jnp.abs(out_f32 - ref))}")

    # 2) Default fast path (bf16 MXU operands, f32 accumulation).
    out_bf16 = jax.block_until_ready(conv_act(x, weight, bias, use_act=True))
    assert jnp.allclose(out_bf16, ref, atol=2e-2, rtol=2e-2), (
        f"bf16 max err {jnp.max(jnp.abs(out_bf16 - ref))}")

    # 3) Multi-strip path (scratch-assembled halo, pipelined strip grid), strict.
    out_tiled = jax.block_until_ready(
        conv_act(x, weight, bias, use_act=True, max_tile_h=8,
                 compute_dtype=jnp.float32))
    assert jnp.allclose(out_tiled, ref, atol=1e-4, rtol=1e-4), (
        f"tiled max err {jnp.max(jnp.abs(out_tiled - ref))}")

    # 4) H not divisible by the strip height (padded-H fallback), strict.
    H2 = 12
    x2 = jax.random.normal(k_x2, (N, C_IN, H2, W), jnp.float32)
    ref2 = jax.block_until_ready(_reference(x2, weight, bias, use_act=True))
    out2 = jax.block_until_ready(
        conv_act(x2, weight, bias, use_act=True, compute_dtype=jnp.float32))
    assert out2.shape == (N, C_OUT, H2, W)
    assert jnp.allclose(out2, ref2, atol=1e-4, rtol=1e-4), (
        f"padded-H max err {jnp.max(jnp.abs(out2 - ref2))}")

    print("KERNEL_OK")
</pallas_src>

<mosaic_0001>
module attributes {stable_mosaic.version = 11 : i64} {
  func.func @_conv_act_kernel(%arg0: i32, %arg1: i32, %arg2: memref<1x16x18x4xf32, #tpu.memory_space<vmem>>, %arg3: memref<1x2x18x4xf32, #tpu.memory_space<vmem>>, %arg4: memref<8x36xf32, #tpu.memory_space<vmem>>, %arg5: memref<8x1xf32, #tpu.memory_space<vmem>>, %arg6: memref<1x8x256xf32, #tpu.memory_space<vmem>>, %arg7: memref<18x18x4xf32, #tpu.memory_space<vmem>>) attributes {dimension_semantics = [#tpu.dimension_semantics<parallel>, #tpu.dimension_semantics<parallel>], iteration_bounds = array<i64: 2, 1>, scalar_prefetch = 0 : i64, scratch_operands = 1 : i64, tpu.core_type = #tpu.core_type<tc>, window_params = [{transform_indices = @transform_0, window_bounds = array<i64: 1, 16, 18, 4>}, {transform_indices = @transform_1, window_bounds = array<i64: 1, 2, 18, 4>}, {pipeline_mode = #tpu.pipeline_mode<synchronous>, transform_indices = @transform_2, window_bounds = array<i64: 8, 36>}, {pipeline_mode = #tpu.pipeline_mode<synchronous>, transform_indices = @transform_3, window_bounds = array<i64: 8, 1>}, {transform_indices = @transform_4, window_bounds = array<i64: 1, 8, 256>}]} {
    %c0 = arith.constant 0 : index
    %c0_0 = arith.constant 0 : index
    %c0_1 = arith.constant 0 : index
    %c0_2 = arith.constant 0 : index
    %0 = vector.load %arg2[%c0, %c0_0, %c0_1, %c0_2] : memref<1x16x18x4xf32, #tpu.memory_space<vmem>>, vector<1x16x18x4xf32>
    %1 = vector.shape_cast %0 : vector<1x16x18x4xf32> to vector<16x18x4xf32>
    %c0_3 = arith.constant 0 : index
    %c0_4 = arith.constant 0 : index
    %c0_5 = arith.constant 0 : index
    %2 = vector.load %arg7[%c0_3, %c0_4, %c0_5] : memref<18x18x4xf32, #tpu.memory_space<vmem>>, vector<16x18x4xf32>
    tpu.vector_store %arg7[%c0_3, %c0_4, %c0_5], %1 {strides = array<i32>} : memref<18x18x4xf32, #tpu.memory_space<vmem>>, vector<16x18x4xf32>,
    %c0_6 = arith.constant 0 : index
    %c0_7 = arith.constant 0 : index
    %c0_8 = arith.constant 0 : index
    %c0_9 = arith.constant 0 : index
    %3 = vector.load %arg3[%c0_6, %c0_7, %c0_8, %c0_9] : memref<1x2x18x4xf32, #tpu.memory_space<vmem>>, vector<1x2x18x4xf32>
    %4 = vector.shape_cast %3 : vector<1x2x18x4xf32> to vector<2x18x4xf32>
    %c16 = arith.constant 16 : index
    %c0_10 = arith.constant 0 : index
    %c0_11 = arith.constant 0 : index
    %5 = vector.load %arg7[%c16, %c0_10, %c0_11] : memref<18x18x4xf32, #tpu.memory_space<vmem>>, vector<2x18x4xf32>
    tpu.vector_store %arg7[%c16, %c0_10, %c0_11], %4 {strides = array<i32>} : memref<18x18x4xf32, #tpu.memory_space<vmem>>, vector<2x18x4xf32>,
    %c0_12 = arith.constant 0 : index
    %c0_13 = arith.constant 0 : index
    %c0_14 = arith.constant 0 : index
    %6 = vector.load %arg7[%c0_12, %c0_13, %c0_14] : memref<18x18x4xf32, #tpu.memory_space<vmem>>, vector<16x16x4xf32>
    %7 = vector.shape_cast %6 : vector<16x16x4xf32> to vector<256x4xf32>
    %c0_15 = arith.constant 0 : index
    %c1 = arith.constant 1 : index
    %c0_16 = arith.constant 0 : index
    %8 = vector.load %arg7[%c0_15, %c1, %c0_16] : memref<18x18x4xf32, #tpu.memory_space<vmem>>, vector<16x16x4xf32>
    %9 = vector.shape_cast %8 : vector<16x16x4xf32> to vector<256x4xf32>
    %c0_17 = arith.constant 0 : index
    %c2 = arith.constant 2 : index
    %c0_18 = arith.constant 0 : index
    %10 = vector.load %arg7[%c0_17, %c2, %c0_18] : memref<18x18x4xf32, #tpu.memory_space<vmem>>, vector<16x16x4xf32>
    %11 = vector.shape_cast %10 : vector<16x16x4xf32> to vector<256x4xf32>
    %12 = tpu.concatenate %7, %9, %11 in 1 : vector<256x4xf32>, vector<256x4xf32>, vector<256x4xf32> -> vector<256x12xf32>
    %c1_19 = arith.constant 1 : index
    %c0_20 = arith.constant 0 : index
    %c0_21 = arith.constant 0 : index
    %13 = vector.load %arg7[%c1_19, %c0_20, %c0_21] : memref<18x18x4xf32, #tpu.memory_space<vmem>>, vector<16x16x4xf32>
    %14 = vector.shape_cast %13 : vector<16x16x4xf32> to vector<256x4xf32>
    %c1_22 = arith.constant 1 : index
    %c1_23 = arith.constant 1 : index
    %c0_24 = arith.constant 0 : index
    %15 = vector.load %arg7[%c1_22, %c1_23, %c0_24] : memref<18x18x4xf32, #tpu.memory_space<vmem>>, vector<16x16x4xf32>
    %16 = vector.shape_cast %15 : vector<16x16x4xf32> to vector<256x4xf32>
    %c1_25 = arith.constant 1 : index
    %c2_26 = arith.constant 2 : index
    %c0_27 = arith.constant 0 : index
    %17 = vector.load %arg7[%c1_25, %c2_26, %c0_27] : memref<18x18x4xf32, #tpu.memory_space<vmem>>, vector<16x16x4xf32>
    %18 = vector.shape_cast %17 : vector<16x16x4xf32> to vector<256x4xf32>
    %19 = tpu.concatenate %14, %16, %18 in 1 : vector<256x4xf32>, vector<256x4xf32>, vector<256x4xf32> -> vector<256x12xf32>
    %c2_28 = arith.constant 2 : index
    %c0_29 = arith.constant 0 : index
    %c0_30 = arith.constant 0 : index
    %20 = vector.load %arg7[%c2_28, %c0_29, %c0_30] : memref<18x18x4xf32, #tpu.memory_space<vmem>>, vector<16x16x4xf32>
    %21 = vector.shape_cast %20 : vector<16x16x4xf32> to vector<256x4xf32>
    %c2_31 = arith.constant 2 : index
    %c1_32 = arith.constant 1 : index
    %c0_33 = arith.constant 0 : index
    %22 = vector.load %arg7[%c2_31, %c1_32, %c0_33] : memref<18x18x4xf32, #tpu.memory_space<vmem>>, vector<16x16x4xf32>
    %23 = vector.shape_cast %22 : vector<16x16x4xf32> to vector<256x4xf32>
    %c2_34 = arith.constant 2 : index
    %c2_35 = arith.constant 2 : index
    %c0_36 = arith.constant 0 : index
    %24 = vector.load %arg7[%c2_34, %c2_35, %c0_36] : memref<18x18x4xf32, #tpu.memory_space<vmem>>, vector<16x16x4xf32>
    %25 = vector.shape_cast %24 : vector<16x16x4xf32> to vector<256x4xf32>
    %26 = tpu.concatenate %21, %23, %25 in 1 : vector<256x4xf32>, vector<256x4xf32>, vector<256x4xf32> -> vector<256x12xf32>
    %27 = tpu.concatenate %12, %19, %26 in 1 : vector<256x12xf32>, vector<256x12xf32>, vector<256x12xf32> -> vector<256x36xf32>
    %c0_37 = arith.constant 0 : index
    %c0_38 = arith.constant 0 : index
    %28 = vector.load %arg4[%c0_37, %c0_38] : memref<8x36xf32, #tpu.memory_space<vmem>>, vector<8x36xf32>
    %cst = arith.constant dense<0.000000e+00> : vector<8x256xf32>
    %29 = tpu.matmul %28, %27, %cst {dimension_numbers = #tpu.dot_dimension_numbers<[1], [1], [0], [0], [0, 0, 1, 0], [], []>} : vector<8x36xf32>, vector<256x36xf32>, vector<8x256xf32> -> vector<8x256xf32>
    %c0_39 = arith.constant 0 : index
    %c0_40 = arith.constant 0 : index
    %30 = vector.load %arg5[%c0_39, %c0_40] : memref<8x1xf32, #tpu.memory_space<vmem>>, vector<8x1xf32>
    %31 = vector.broadcast %30 : vector<8x1xf32> to vector<8x256xf32>
    %32 = arith.addf %29, %31 : vector<8x256xf32>
    %cst_41 = arith.constant 0.000000e+00 : f32
    %33 = vector.broadcast %cst_41 : f32 to vector<8x256xf32>
    %34 = arith.cmpf ogt, %32, %33 : vector<8x256xf32>
    %cst_42 = arith.constant 0.00999999977 : f32
    %35 = vector.broadcast %cst_42 : f32 to vector<8x256xf32>
    %36 = arith.mulf %35, %32 : vector<8x256xf32>
    %37 = arith.select %34, %32, %36 : vector<8x256xi1>, vector<8x256xf32>
    %c0_43 = arith.constant 0 : index
    %c0_44 = arith.constant 0 : index
    %c0_45 = arith.constant 0 : index
    %38 = vector.load %arg6[%c0_43, %c0_44, %c0_45] : memref<1x8x256xf32, #tpu.memory_space<vmem>>, vector<1x8x256xf32>
    %39 = vector.shape_cast %38 : vector<1x8x256xf32> to vector<8x256xf32>
    %40 = vector.shape_cast %37 : vector<8x256xf32> to vector<1x8x256xf32>
    tpu.vector_store %arg6[%c0_43, %c0_44, %c0_45], %40 {strides = array<i32>} : memref<1x8x256xf32, #tpu.memory_space<vmem>>, vector<1x8x256xf32>,
    return
  }
  func.func @transform_0(%arg0: i32, %arg1: i32) -> (i32, i32, i32, i32) {
    %c0_i32 = arith.constant 0 : i32
    %c0_i32_0 = arith.constant 0 : i32
    %c0_i32_1 = arith.constant 0 : i32
    return %arg0, %arg1, %c0_i32, %c0_i32_0 : i32, i32, i32, i32
  }
  func.func @transform_1(%arg0: i32, %arg1: i32) -> (i32, i32, i32, i32) {
    %c0_i32 = arith.constant 0 : i32
    %c0_i32_0 = arith.constant 0 : i32
    %c0_i32_1 = arith.constant 0 : i32
    return %arg0, %arg1, %c0_i32, %c0_i32_0 : i32, i32, i32, i32
  }
  func.func @transform_2(%arg0: i32, %arg1: i32) -> (i32, i32) {
    %c0_i32 = arith.constant 0 : i32
    %c0_i32_0 = arith.constant 0 : i32
    %c0_i32_1 = arith.constant 0 : i32
    return %c0_i32, %c0_i32_0 : i32, i32
  }
  func.func @transform_3(%arg0: i32, %arg1: i32) -> (i32, i32) {
    %c0_i32 = arith.constant 0 : i32
    %c0_i32_0 = arith.constant 0 : i32
    %c0_i32_1 = arith.constant 0 : i32
    return %c0_i32, %c0_i32_0 : i32, i32
  }
  func.func @transform_4(%arg0: i32, %arg1: i32) -> (i32, i32, i32) {
    %c0_i32 = arith.constant 0 : i32
    %c0_i32_0 = arith.constant 0 : i32
    return %arg0, %c0_i32, %arg1 : i32, i32, i32
  }
}

</mosaic_0001>

<bundles_post_ra>
// kernel: _conv_act_impl.1
= control target key start
LH: loop header
LB: loop body
LE: loop exit
PB: predicated region body
PF: predicated region fallthrough
CT: control target
= control target key end

     0   :  { %s2389_s15 = smov 0   ;;  %s2391_s16 = smov 0   ;;  %s3975_s0 = inlined_call_operand.vmem [shape: f32[2,18,18,4], index: 0, kind: input, shape index: {}]   ;;  %s3976_s1 = inlined_call_operand.vmem [shape: f32[2,2,18,4], index: 1, kind: input, shape index: {}]   ;;  %s3977_s2 = inlined_call_operand.vmem [shape: f32[8,36], index: 2, kind: input, shape index: {}]   ;;  %s3978_s3 = inlined_call_operand.vmem [shape: f32[8,1], index: 3, kind: input, shape index: {}]   ;;  %s3979_s4 = inlined_call_operand.vmem [shape: f32[2,8,256], index: 4, kind: output, shape index: {}]  }
   0x1   :  { %s2393_s17 = smov 0  }
   0x2 LB: > { %s26_s18 = sadd.s32 1, %s2353_s16  ;;  %p2258_p0 = scmp.ge.s32.totalorder %s2357_s17, 1  ;;  %s2357_s17 = sphi %s2393_s17, %s14_s17   ;;  %s2353_s16 = sphi %s2391_s16, %s4188_s16   ;;  %s2349_s15 = sphi %s2389_s15, %s4187_s15  }
   0x3   : > { %p28_p1 = scmp.ge.s32.totalorder %s26_s18, 2  ;;  %p212_p2 = scmp.lt.s32.totalorder %s2357_s17, 3 }
   0x5   : > { %s4190_s18 = smov (%p28_p1, %s26_s18), 0  ;;  %p213_p3 = pnand %p2258_p0, %p212_p2 }
   0x7   : > { %216 = sbr.rel (%p213_p3) target bundleno = 1016 (0x3f8), region = 36 }
   0xc   : > { %p268_p4 = scmp.lt.s32.totalorder %s2349_s15, 1  ;;  %vm352_vm0 = vcmask 31744   ;;  %vm355_vm1 = vcmask 25600   ;;  %s2359_s23 = smov 4   ;;  %vm799_vm2 = vcmask 64512   ;;  %vm1955_vm3 = vcmask 195584  }
   0xd   : > { %s2360_s24 = smov 8   ;;  %s2361_s29 = smov 12   ;;  %vm1922_vm4 = vcmask 97280   ;;  %vm1995_vm5 = vcmask 293888  }
   0xe   : > { %s4192_s15 = smov (!%p268_p4, %s2349_s15), 1  ;;  %s2362_s30 = smov 24  }
   0xf   : > { %s2300_s19 = smul.u32 432, %s4192_s15  ;;  %s2299_s9 = sshll.u32 %s4192_s15, 4 }
  0x10   : > { %s2301_s25 = smul.u32 48, %s4192_s15  ;;  %s302_s12 = scalar_lea.vmem %s3979_s4, %s2299_s9 }
  0x11   : > { %s2413_s22 = scalar_lea.vmem %s3975_s0, %s2300_s19 }
  0x12   : > { %v310_v0 = vld [vmem:[%s2413_s22 + $0x30] sm:$0xff]  ;;  %v311_v1 = vld [vmem:[%s2413_s22 + $0x38] sm:$0xff]  ;;  %v308_v3 = vld [vmem:[%s2413_s22 + $0x20] sm:$0xff]  ;;  %s2867_s28 = scalar_lea.vmem %s3976_s1, %s2301_s25 }
  0x13   : > { %v307_v2 = vld [vmem:[%s2413_s22 + $0x18] sm:$0xff]  ;;  %360 = vst.msk [vmem:[#allocation2 + $0x30] sm:$0xff] %vm352_vm0, %v310_v0  ;;  %v304_v4 = vld [vmem:[%s2413_s22] sm:$0xff]  ;;  %v305_v5 = vld [vmem:[%s2413_s22 + $0x8] sm:$0xff] }
  0x14   : > { %361 = vst.msk [vmem:[#allocation2 + $0x38] sm:$0xff] %vm352_vm0, %v311_v1  ;;  %v312_v6 = vld [vmem:[%s2413_s22 + $0x40] sm:$0x3]  ;;  %v309_v7 = vld [vmem:[%s2413_s22 + $0x28] sm:$0x3]  ;;  %v314_v12 = vld [vmem:[%s2413_s22 + $0x50] sm:$0xff] }
  0x15   : > { %357 = vst.msk [vmem:[#allocation2 + $0x18] sm:$0xff] %vm352_vm0, %v307_v2  ;;  %v306_v8 = vld [vmem:[%s2413_s22 + $0x10] sm:$0x3]  ;;  %v316_v9 = vld [vmem:[%s2413_s22 + $0x60] sm:$0xff]  ;;  %v317_v10 = vld [vmem:[%s2413_s22 + $0x68] sm:$0xff] }
  0x16   : > { %358 = vst.msk [vmem:[#allocation2 + $0x20] sm:$0xff] %vm352_vm0, %v308_v3  ;;  %v315_v13 = vld [vmem:[%s2413_s22 + $0x58] sm:$0x3]  ;;  %v313_v15 = vld [vmem:[%s2413_s22 + $0x48] sm:$0xff]  ;;  %v320_v16 = vld [vmem:[%s2413_s22 + $0x80] sm:$0xff] }
  0x17   : > { %353 = vst.msk [vmem:[#allocation2] sm:$0xff] %vm352_vm0, %v304_v4  ;;  %v321_v18 = vld [vmem:[%s2413_s22 + $0x88] sm:$0x3]  ;;  %v319_v19 = vld [vmem:[%s2413_s22 + $0x78] sm:$0xff]  ;;  %v318_v21 = vld [vmem:[%s2413_s22 + $0x70] sm:$0x3] }
  0x18   : > { %354 = vst.msk [vmem:[#allocation2 + $0x8] sm:$0xff] %vm352_vm0, %v305_v5  ;;  %v325_v22 = vld [vmem:[%s2413_s22 + $0xa8] sm:$0xff]  ;;  %v326_v24 = vld [vmem:[%s2413_s22 + $0xb0] sm:$0xff]  ;;  %v323_v25 = vld [vmem:[%s2413_s22 + $0x98] sm:$0xff] }
  0x19   : > { %362 = vst.msk [vmem:[#allocation2 + $0x40] sm:$0x3] %vm355_vm1, %v312_v6  ;;  %v324_v27 = vld [vmem:[%s2413_s22 + $0xa0] sm:$0x3]  ;;  %v322_v28 = vld [vmem:[%s2413_s22 + $0x90] sm:$0xff]  ;;  %v329_v29 = vld [vmem:[%s2413_s22 + $0xc8] sm:$0xff] }
  0x1a   : > { %359 = vst.msk [vmem:[#allocation2 + $0x28] sm:$0x3] %vm355_vm1, %v309_v7  ;;  %v330_v30 = vld [vmem:[%s2413_s22 + $0xd0] sm:$0x3]  ;;  %v328_v32 = vld [vmem:[%s2413_s22 + $0xc0] sm:$0xff]  ;;  %v335_v36 = vld [vmem:[%s2413_s22 + $0xf8] sm:$0xff] }
  0x1b   : > { %v2434_v11 = vld [vmem:[#allocation2 + $0x31] sm:$0xff]  ;;  %356 = vst.msk [vmem:[#allocation2 + $0x10] sm:$0x3] %vm355_vm1, %v306_v8  ;;  %v332_v38 = vld [vmem:[%s2413_s22 + $0xe0] sm:$0xff]  ;;  %v333_v39 = vld [vmem:[%s2413_s22 + $0xe8] sm:$0x3] }
  0x1c   : > { %551 = vrot.lane.b32.xlu2 %v2434_v11, %s2359_s23  ;;  %366 = vst.msk [vmem:[#allocation2 + $0x60] sm:$0xff] %vm352_vm0, %v316_v9  ;;  %v327_v33 = vld [vmem:[%s2413_s22 + $0xb8] sm:$0x3]  ;;  %v334_v35 = vld [vmem:[%s2413_s22 + $0xf0] sm:$0xff]  ;;  %v337_v44 = vld [vmem:[%s2413_s22 + $0x108] sm:$0xff] }
  0x1d   : > { %v2442_v14 = vld [vmem:[#allocation2 + $0x19] sm:$0xff]  ;;  %367 = vst.msk [vmem:[#allocation2 + $0x68] sm:$0xff] %vm352_vm0, %v317_v10  ;;  %v338_v41 = vld [vmem:[%s2413_s22 + $0x110] sm:$0xff]  ;;  %v341_v50 = vld [vmem:[%s2413_s22 + $0x128] sm:$0xff] }
  0x1e   : > { %547 = vrot.lane.b32.xlu1 %v2442_v14, %s2359_s23  ;;  %364 = vst.msk [vmem:[#allocation2 + $0x50] sm:$0xff] %vm352_vm0, %v314_v12  ;;  %v331_v40 = vld [vmem:[%s2413_s22 + $0xd8] sm:$0xff]  ;;  %v336_v46 = vld [vmem:[%s2413_s22 + $0x100] sm:$0x3]  ;;  %v342_v51 = vld [vmem:[%s2413_s22 + $0x130] sm:$0x3] }
  0x1f   : > { %v447_v17 = vld [vmem:[#allocation2 + $0x1] sm:$0xff]  ;;  %365 = vst.msk [vmem:[#allocation2 + $0x58] sm:$0x3] %vm355_vm1, %v315_v13  ;;  %v339_v43 = vld [vmem:[%s2413_s22 + $0x118] sm:$0x3]  ;;  %v346_v58 = vld [vmem:[%s2413_s22 + $0x150] sm:$0xff] }
  0x20   : > { %543 = vrot.lane.b32.xlu0 %v447_v17, %s2359_s23  ;;  %363 = vst.msk [vmem:[#allocation2 + $0x48] sm:$0xff] %vm352_vm0, %v313_v15  ;;  %v2455_v20 = vld [vmem:[#allocation2 + $0x39] sm:$0xff]  ;;  %v345_v59 = vld [vmem:[%s2413_s22 + $0x148] sm:$0x3]  ;;  %v350_v63 = vld [vmem:[%s2413_s22 + $0x170] sm:$0xff] }
  0x21   : > { %370 = vst.msk [vmem:[#allocation2 + $0x80] sm:$0xff] %vm352_vm0, %v320_v16  ;;  %v2461_v23 = vld [vmem:[#allocation2 + $0x21] sm:$0xff]  ;;  %v343_v48 = vld [vmem:[%s2413_s22 + $0x138] sm:$0xff] }
  0x22   : > { %371 = vst.msk [vmem:[#allocation2 + $0x88] sm:$0x3] %vm355_vm1, %v321_v18  ;;  %v448_v26 = vld [vmem:[#allocation2 + $0x9] sm:$0xff]  ;;  %v344_v49 = vld [vmem:[%s2413_s22 + $0x140] sm:$0xff]  ;;  %v347_v56 = vld [vmem:[%s2413_s22 + $0x158] sm:$0xff] }
  0x23   : > { %369 = vst.msk [vmem:[#allocation2 + $0x78] sm:$0xff] %vm352_vm0, %v319_v19  ;;  %v340_v53 = vld [vmem:[%s2413_s22 + $0x120] sm:$0xff]  ;;  %v351_v0 = vld [vmem:[%s2413_s22 + $0x178] sm:$0x3]  ;;  %v349_v1 = vld [vmem:[%s2413_s22 + $0x168] sm:$0xff] }
  0x24   : > { %553 = vrot.lane.b32.xlu2 %v2455_v20, %s2359_s23  ;;  %368 = vst.msk [vmem:[#allocation2 + $0x70] sm:$0x3] %vm355_vm1, %v318_v21  ;;  %v2480_v31 = vld [vmem:[#allocation2 + $0x61] sm:$0xff] }
  0x25   : > { %375 = vst.msk [vmem:[#allocation2 + $0xa8] sm:$0xff] %vm352_vm0, %v325_v22  ;;  %v348_v57 = vld [vmem:[%s2413_s22 + $0x160] sm:$0x3]  ;;  %v479_v16 = vld [vmem:[#allocation2 + $0x2] sm:$0xff]  ;;  %v480_v22 = vld [vmem:[#allocation2 + $0xa] sm:$0xff] }
  0x26   : > { %549 = vrot.lane.b32.xlu1 %v2461_v23, %s2359_s23  ;;  %376 = vst.msk [vmem:[#allocation2 + $0xb0] sm:$0xff] %vm352_vm0, %v326_v24  ;;  %v2486_v34 = vld [vmem:[#allocation2 + $0x51] sm:$0xff]  ;;  %v2634_v19 = vld [vmem:[#allocation2 + $0x22] sm:$0xff]  ;;  %v2636_v21 = vld [vmem:[#allocation2 + $0x1a] sm:$0xff] }
  0x27   : > { %373 = vst.msk [vmem:[#allocation2 + $0x98] sm:$0xff] %vm352_vm0, %v323_v25  ;;  %v2494_v37 = vld [vmem:[#allocation2 + $0x49] sm:$0xff] }
  0x28   : > { %545 = vrot.lane.b32.xlu0 %v448_v26, %s2359_s23  ;;  %374 = vst.msk [vmem:[#allocation2 + $0xa0] sm:$0x3] %vm355_vm1, %v324_v27  ;;  %v2645_v25 = vld [vmem:[#allocation2 + $0x4a] sm:$0xff]  ;;  %v2647_v26 = vld [vmem:[#allocation2 + $0x3a] sm:$0xff]  ;;  %v2651_v27 = vld [vmem:[#allocation2 + $0x32] sm:$0xff] }
  0x29   : > { %372 = vst.msk [vmem:[#allocation2 + $0x90] sm:$0xff] %vm352_vm0, %v322_v28  ;;  %v2508_v42 = vld [vmem:[#allocation2 + $0x81] sm:$0xff] }
  0x2a   : > { %379 = vst.msk [vmem:[#allocation2 + $0xc8] sm:$0xff] %vm352_vm0, %v329_v29  ;;  %v2514_v45 = vld [vmem:[#allocation2 + $0x79] sm:$0xff] }
  0x2b   : > { %380 = vst.msk [vmem:[#allocation2 + $0xd0] sm:$0x3] %vm355_vm1, %v330_v30  ;;  %v2521_v47 = vld [vmem:[#allocation2 + $0x69] sm:$0xff] }
  0x2c   : > { %559 = vrot.lane.b32.xlu2 %v2480_v31, %s2359_s23  ;;  %378 = vst.msk [vmem:[#allocation2 + $0xc0] sm:$0xff] %vm352_vm0, %v328_v32  ;;  %v2659_v29 = vld [vmem:[#allocation2 + $0x6a] sm:$0xff]  ;;  %v2661_v30 = vld [vmem:[#allocation2 + $0x62] sm:$0xff]  ;;  %v2665_v32 = vld [vmem:[#allocation2 + $0x52] sm:$0xff] }
  0x2d   : > { %377 = vst.msk [vmem:[#allocation2 + $0xb8] sm:$0x3] %vm355_vm1, %v327_v33  ;;  %v2534_v52 = vld [vmem:[#allocation2 + $0xa9] sm:$0xff] }
  0x2e   : > { %557 = vrot.lane.b32.xlu1 %v2486_v34, %s2359_s23  ;;  %384 = vst.msk [vmem:[#allocation2 + $0xf0] sm:$0xff] %vm352_vm0, %v334_v35 }
  0x2f   : > { %385 = vst.msk [vmem:[#allocation2 + $0xf8] sm:$0xff] %vm352_vm0, %v335_v36  ;;  %v2539_v54 = vld [vmem:[#allocation2 + $0x99] sm:$0xff]  ;;  %v2675_v36 = vld [vmem:[#allocation2 + $0x82] sm:$0xff] }
  0x30   : > { %555 = vrot.lane.b32.xlu0 %v2494_v37, %s2359_s23  ;;  %382 = vst.msk [vmem:[#allocation2 + $0xe0] sm:$0xff] %vm352_vm0, %v332_v38  ;;  %v2545_v55 = vld [vmem:[#allocation2 + $0x91] sm:$0xff]  ;;  %v2679_v38 = vld [vmem:[#allocation2 + $0x7a] sm:$0xff] }
  0x31   : > { %383 = vst.msk [vmem:[#allocation2 + $0xe8] sm:$0x3] %vm355_vm1, %v333_v39  ;;  %v2673_v35 = vld [vmem:[#allocation2 + $0x92] sm:$0xff] }
  0x32   : > { %381 = vst.msk [vmem:[#allocation2 + $0xd8] sm:$0xff] %vm352_vm0, %v331_v40  ;;  %v2556_v60 = vld [vmem:[#allocation2 + $0xc9] sm:$0xff] }
  0x33   : > { %388 = vst.msk [vmem:[#allocation2 + $0x110] sm:$0xff] %vm352_vm0, %v338_v41  ;;  %v2560_v61 = vld [vmem:[#allocation2 + $0xc1] sm:$0xff] }
  0x34   : > { %565 = vrot.lane.b32.xlu2 %v2508_v42, %s2359_s23  ;;  %389 = vst.msk [vmem:[#allocation2 + $0x118] sm:$0x3] %vm355_vm1, %v339_v43  ;;  %v2565_v62 = vld [vmem:[#allocation2 + $0xb1] sm:$0xff] }
  0x35   : > { %387 = vst.msk [vmem:[#allocation2 + $0x108] sm:$0xff] %vm352_vm0, %v337_v44  ;;  %v2689_v41 = vld [vmem:[#allocation2 + $0xb2] sm:$0xff]  ;;  %v2693_v44 = vld [vmem:[#allocation2 + $0xaa] sm:$0xff] }
  0x36   : > { %563 = vrot.lane.b32.xlu1 %v2514_v45, %s2359_s23  ;;  %386 = vst.msk [vmem:[#allocation2 + $0x100] sm:$0x3] %vm355_vm1, %v336_v46  ;;  %v2575_v2 = vld [vmem:[#allocation2 + $0xf1] sm:$0xff]  ;;  %v2697_v46 = vld [vmem:[#allocation2 + $0x9a] sm:$0xff] }
  0x37   : > { %393 = vst.msk [vmem:[#allocation2 + $0x138] sm:$0xff] %vm352_vm0, %v343_v48 }
  0x38   : > { %561 = vrot.lane.b32.xlu0 %v2521_v47, %s2359_s23  ;;  %394 = vst.msk [vmem:[#allocation2 + $0x140] sm:$0xff] %vm352_vm0, %v344_v49  ;;  %v2579_v3 = vld [vmem:[#allocation2 + $0xe1] sm:$0xff] }
  0x39   : > { %391 = vst.msk [vmem:[#allocation2 + $0x128] sm:$0xff] %vm352_vm0, %v341_v50  ;;  %v2583_v4 = vld [vmem:[#allocation2 + $0xd9] sm:$0xff] }
  0x3a   : > { %392 = vst.msk [vmem:[#allocation2 + $0x130] sm:$0x3] %vm355_vm1, %v342_v51  ;;  %v2707_v50 = vld [vmem:[#allocation2 + $0xda] sm:$0xff] }
  0x3b   : > { %390 = vst.msk [vmem:[#allocation2 + $0x120] sm:$0xff] %vm352_vm0, %v340_v53  ;;  %v2589_v5 = vld [vmem:[#allocation2 + $0x111] sm:$0xff] }
  0x3c   : > { %571 = vrot.lane.b32.xlu2 %v2534_v52, %s2359_s23  ;;  %397 = vst.msk [vmem:[#allocation2 + $0x158] sm:$0xff] %vm352_vm0, %v347_v56  ;;  %v2591_v6 = vld [vmem:[#allocation2 + $0x109] sm:$0xff] }
  0x3d   : > { %398 = vst.msk [vmem:[#allocation2 + $0x160] sm:$0x3] %vm355_vm1, %v348_v57  ;;  %v2595_v7 = vld [vmem:[#allocation2 + $0xf9] sm:$0xff]  ;;  %v2711_v53 = vld [vmem:[#allocation2 + $0xca] sm:$0xff]  ;;  %v2715_v56 = vld [vmem:[#allocation2 + $0xc2] sm:$0xff] }
  0x3e   : > { %569 = vrot.lane.b32.xlu1 %v2539_v54, %s2359_s23  ;;  %396 = vst.msk [vmem:[#allocation2 + $0x150] sm:$0xff] %vm352_vm0, %v346_v58 }
  0x3f   : > { %395 = vst.msk [vmem:[#allocation2 + $0x148] sm:$0x3] %vm355_vm1, %v345_v59  ;;  %v2601_v8 = vld [vmem:[#allocation2 + $0x139] sm:$0xff] }
  0x40   : > { %567 = vrot.lane.b32.xlu0 %v2545_v55, %s2359_s23  ;;  %400 = vst.msk [vmem:[#allocation2 + $0x170] sm:$0xff] %vm352_vm0, %v350_v63  ;;  %v2725_v59 = vld [vmem:[#allocation2 + $0xfa] sm:$0xff] }
  0x41   : > { %401 = vst.msk [vmem:[#allocation2 + $0x178] sm:$0x3] %vm355_vm1, %v351_v0  ;;  %v2603_v9 = vld [vmem:[#allocation2 + $0x129] sm:$0xff]  ;;  %v2729_v0 = vld [vmem:[#allocation2 + $0xf2] sm:$0xff] }
  0x42   : > { %399 = vst.msk [vmem:[#allocation2 + $0x168] sm:$0xff] %vm352_vm0, %v349_v1  ;;  %v2607_v10 = vld [vmem:[#allocation2 + $0x121] sm:$0xff] }
  0x43   : > { %v2733_v1 = vld [vmem:[#allocation2 + $0xe2] sm:$0xff] }
  0x44   : > { %577 = vrot.lane.b32.xlu2 %v2556_v60, %s2359_s23  ;;  %v2613_v12 = vld [vmem:[#allocation2 + $0x159] sm:$0xff] }
  0x45   : > { %v2615_v13 = vld [vmem:[#allocation2 + $0x151] sm:$0xff] }
  0x46   : > { %575 = vrot.lane.b32.xlu1 %v2560_v61, %s2359_s23  ;;  %v2619_v15 = vld [vmem:[#allocation2 + $0x141] sm:$0xff] }
  0x48   : > { %573 = vrot.lane.b32.xlu0 %v2565_v62, %s2359_s23  ;;  %v2625_v17 = vld [vmem:[#allocation2 + $0x171] sm:$0xff] }
  0x49   : > { %v2628_v18 = vld [vmem:[#allocation2 + $0x169] sm:$0xff] }
  0x4c   : > { %583 = vrot.lane.b32.xlu2 %v2575_v2, %s2359_s23 }
  0x4e   : > { %581 = vrot.lane.b32.xlu1 %v2579_v3, %s2359_s23 }
  0x50   : > { %579 = vrot.lane.b32.xlu0 %v2583_v4, %s2359_s23 }
  0x54   : > { %589 = vrot.lane.b32.xlu2 %v2589_v5, %s2359_s23 }
  0x56   : > { %587 = vrot.lane.b32.xlu1 %v2591_v6, %s2359_s23 }
  0x58   : > { %585 = vrot.lane.b32.xlu0 %v2595_v7, %s2359_s23 }
  0x5c   : > { %595 = vrot.lane.b32.xlu2 %v2601_v8, %s2359_s23 }
  0x5e   : > { %593 = vrot.lane.b32.xlu1 %v2603_v9, %s2359_s23 }
  0x60   : > { %591 = vrot.lane.b32.xlu0 %v2607_v10, %s2359_s23 }
  0x64   : > { %601 = vrot.lane.b32.xlu2 %v2613_v12, %s2359_s23 }
  0x66   : > { %599 = vrot.lane.b32.xlu1 %v2615_v13, %s2359_s23 }
  0x68   : > { %597 = vrot.lane.b32.xlu0 %v2619_v15, %s2359_s23 }
  0x6c   : > { %671 = vrot.lane.b32.xlu2 %v479_v16, %s2360_s24 }
  0x6e   : > { %605 = vrot.lane.b32.xlu1 %v2625_v17, %s2359_s23 }
  0x70   : > { %603 = vrot.lane.b32.xlu0 %v2628_v18, %s2359_s23 }
  0x74   : > { %677 = vrot.lane.b32.xlu2 %v2634_v19, %s2360_s24 }
  0x76   : > { %675 = vrot.lane.b32.xlu1 %v2636_v21, %s2360_s24  ;;  %v2642_v24 = vpop.permute.xlu2 %551 }
  0x77   : > { %3981 = vst [vmem:[#allocation3_spill] sm:$0xff] %v2642_v24 }
  0x78   : > { %673 = vrot.lane.b32.xlu0 %v480_v22, %s2360_s24 }
  0x7c   : > { %683 = vrot.lane.b32.xlu2 %v2645_v25, %s2360_s24 }
  0x7e   : > { %681 = vrot.lane.b32.xlu1 %v2647_v26, %s2360_s24  ;;  %v2655_v28 = vpop.permute.xlu2 %553 }
  0x7f   : > { %3982 = vst [vmem:[#allocation4_spill] sm:$0xff] %v2655_v28 }
  0x80   : > { %679 = vrot.lane.b32.xlu0 %v2651_v27, %s2360_s24 }
  0x84   : > { %689 = vrot.lane.b32.xlu2 %v2659_v29, %s2360_s24 }
  0x86   : > { %687 = vrot.lane.b32.xlu1 %v2661_v30, %s2360_s24  ;;  %v2669_v33 = vpop.permute.xlu2 %559 }
  0x87   : > { %3983 = vst [vmem:[#allocation5_spill] sm:$0xff] %v2669_v33 }
  0x88   : > { %685 = vrot.lane.b32.xlu0 %v2665_v32, %s2360_s24 }
  0x8c   : > { %695 = vrot.lane.b32.xlu2 %v2673_v35, %s2360_s24 }
  0x8e   : > { %693 = vrot.lane.b32.xlu1 %v2675_v36, %s2360_s24  ;;  %v2683_v39 = vpop.permute.xlu2 %565 }
  0x8f   : > { %3984 = vst [vmem:[#allocation6_spill] sm:$0xff] %v2683_v39  ;;  %v2783_v39 = vld [vmem:[#allocation2 + $0x15a] sm:$0xff] }
  0x90   : > { %691 = vrot.lane.b32.xlu0 %v2679_v38, %s2360_s24  ;;  %v2687_v40 = vpop.permute.xlu1 %547  ;;  %4002 = vst [vmem:[#allocation24_spill] sm:$0xff] %v2783_v39 }
  0x91   : > { %3985 = vst [vmem:[#allocation7_spill] sm:$0xff] %v2687_v40  ;;  %v2751_v40 = vld [vmem:[#allocation2 + $0x10a] sm:$0xff] }
  0x92   : > { %v2691_v43 = vpop.permute.xlu0 %543 }
  0x93   : > { %3986 = vst [vmem:[#allocation8_spill] sm:$0xff] %v2691_v43  ;;  %v2743_v43 = vld [vmem:[#allocation2 + $0x122] sm:$0xff] }
  0x94   : > { %701 = vrot.lane.b32.xlu2 %v2689_v41, %s2360_s24 }
  0x96   : > { %699 = vrot.lane.b32.xlu1 %v2693_v44, %s2360_s24  ;;  %v2701_v48 = vpop.permute.xlu2 %571 }
  0x97   : > { %3987 = vst [vmem:[#allocation9_spill] sm:$0xff] %v2701_v48  ;;  %v2801_v48 = vld [vmem:[#allocation2 + $0x172] sm:$0xff] }
  0x98   : > { %697 = vrot.lane.b32.xlu0 %v2697_v46, %s2360_s24  ;;  %v2705_v49 = vpop.permute.xlu1 %549 }
  0x99   : > { %3988 = vst [vmem:[#allocation10_spill] sm:$0xff] %v2705_v49 }
  0x9a   : > { %v2709_v51 = vpop.permute.xlu0 %545 }
  0x9b   : > { %3989 = vst [vmem:[#allocation11_spill] sm:$0xff] %v2709_v51 }
  0x9c   : > { %707 = vrot.lane.b32.xlu2 %v2707_v50, %s2360_s24 }
  0x9e   : > { %705 = vrot.lane.b32.xlu1 %v2711_v53, %s2360_s24  ;;  %v2719_v57 = vpop.permute.xlu2 %577 }
  0x9f   : > { %3990 = vst [vmem:[#allocation12_spill] sm:$0xff] %v2719_v57  ;;  %v2747_v57 = vld [vmem:[#allocation2 + $0x112] sm:$0xff] }
  0xa0   : > { %703 = vrot.lane.b32.xlu0 %v2715_v56, %s2360_s24  ;;  %v2723_v58 = vpop.permute.xlu1 %557 }
  0xa1   : > { %3991 = vst [vmem:[#allocation13_spill] sm:$0xff] %v2723_v58  ;;  %v2769_v58 = vld [vmem:[#allocation2 + $0x12a] sm:$0xff] }
  0xa2   : > { %v2727_v63 = vpop.permute.xlu0 %555 }
  0xa3   : > { %3992 = vst [vmem:[#allocation14_spill] sm:$0xff] %v2727_v63  ;;  %v2765_v63 = vld [vmem:[#allocation2 + $0x13a] sm:$0xff] }
  0xa4   : > { %713 = vrot.lane.b32.xlu2 %v2725_v59, %s2360_s24 }
  0xa6   : > { %711 = vrot.lane.b32.xlu1 %v2729_v0, %s2360_s24  ;;  %v2737_v16 = vpop.permute.xlu2 %583 }
  0xa7   : > { %3993 = vst [vmem:[#allocation15_spill] sm:$0xff] %v2737_v16  ;;  %v2761_v16 = vld [vmem:[#allocation2 + $0x142] sm:$0xff] }
  0xa8   : > { %709 = vrot.lane.b32.xlu0 %v2733_v1, %s2360_s24  ;;  %v2741_v22 = vpop.permute.xlu1 %563 }
  0xa9   : > { %3994 = vst [vmem:[#allocation16_spill] sm:$0xff] %v2741_v22 }
  0xaa   : > { %v2745_v51 = vpop.permute.xlu0 %561 }
  0xab   : > { %3995 = vst [vmem:[#allocation17_spill] sm:$0xff] %v2745_v51  ;;  %v2779_v51 = vld [vmem:[#allocation2 + $0x16a] sm:$0xff] }
  0xac   : > { %719 = vrot.lane.b32.xlu2 %v2743_v43, %s2360_s24 }
  0xae   : > { %717 = vrot.lane.b32.xlu1 %v2747_v57, %s2360_s24  ;;  %v2755_v49 = vpop.permute.xlu2 %589 }
  0xaf   : > { %3996 = vst [vmem:[#allocation18_spill] sm:$0xff] %v2755_v49 }
  0xb0   : > { %715 = vrot.lane.b32.xlu0 %v2751_v40, %s2360_s24  ;;  %v2759_v24 = vpop.permute.xlu1 %569 }
  0xb1   : > { %3997 = vst [vmem:[#allocation19_spill] sm:$0xff] %v2759_v24 }
  0xb2   : > { %v2763_v28 = vpop.permute.xlu0 %567 }
  0xb3   : > { %3998 = vst [vmem:[#allocation20_spill] sm:$0xff] %v2763_v28  ;;  %v2787_v28 = vld [vmem:[#allocation2 + $0x152] sm:$0xff] }
  0xb4   : > { %725 = vrot.lane.b32.xlu2 %v2761_v16, %s2360_s24 }
  0xb6   : > { %723 = vrot.lane.b32.xlu1 %v2765_v63, %s2360_s24  ;;  %v2773_v49 = vpop.permute.xlu2 %595 }
  0xb7   : > { %3999 = vst [vmem:[#allocation21_spill] sm:$0xff] %v2773_v49 }
  0xb8   : > { %721 = vrot.lane.b32.xlu0 %v2769_v58, %s2360_s24  ;;  %v2777_v33 = vpop.permute.xlu1 %575 }
  0xb9   : > { %4000 = vst [vmem:[#allocation22_spill] sm:$0xff] %v2777_v33 }
  0xba   : > { %v2781_v22 = vpop.permute.xlu0 %573 }
  0xbb   : > { %4001 = vst [vmem:[#allocation23_spill] sm:$0xff] %v2781_v22 }
  0xbc   : > { %731 = vrot.lane.b32.xlu2 %v2779_v51, %s2360_s24 }
  0xbe   : > { %729 = vrot.lane.b32.xlu1 %v2783_v39, %s2360_s24  ;;  %v2791_v49 = vpop.permute.xlu2 %601 }
  0xbf   : > { %4003 = vst [vmem:[#allocation25_spill] sm:$0xff] %v2791_v49 }
  0xc0   : > { %727 = vrot.lane.b32.xlu0 %v2787_v28, %s2360_s24  ;;  %v2795_v33 = vpop.permute.xlu1 %581 }
  0xc1   : > { %4004 = vst [vmem:[#allocation26_spill] sm:$0xff] %v2795_v33 }
  0xc2   : > { %v2797_v24 = vpop.permute.xlu0 %579 }
  0xc3   : > { %4005 = vst [vmem:[#allocation27_spill] sm:$0xff] %v2797_v24 }
  0xc4   : > { %963 = vrot.lane.b32.xlu2 %v2461_v23, %s2359_s23 }
  0xc6   : > { %961 = vrot.lane.b32.xlu1 %v2442_v14, %s2359_s23  ;;  %v2805_v22 = vpop.permute.xlu2 %671 }
  0xc7   : > { %4006 = vst [vmem:[#allocation28_spill] sm:$0xff] %v2805_v22 }
  0xc8   : > { %733 = vrot.lane.b32.xlu0 %v2801_v48, %s2360_s24  ;;  %v2809_v49 = vpop.permute.xlu1 %587 }
  0xc9   : > { %4007 = vst [vmem:[#allocation29_spill] sm:$0xff] %v2809_v49  ;;  %v1287_v49 = vld [vmem:[#allocation2 + $0x69] sm:$0xff] }
  0xca   : > { %v2811_v39 = vpop.permute.xlu0 %585 }
  0xcb   : > { %4008 = vst [vmem:[#allocation30_spill] sm:$0xff] %v2811_v39 }
  0xcc   : > { %969 = vrot.lane.b32.xlu2 %v2494_v37, %s2359_s23 }
  0xce   : > { %967 = vrot.lane.b32.xlu1 %v2455_v20, %s2359_s23  ;;  %v2817_v23 = vpop.permute.xlu2 %677 }
  0xcf   : > { %4009 = vst [vmem:[#allocation31_spill] sm:$0xff] %v2817_v23  ;;  %v1285_v23 = vld [vmem:[#allocation2 + $0x51] sm:$0xff] }
  0xd0   : > { %965 = vrot.lane.b32.xlu0 %v2434_v11, %s2359_s23  ;;  %v2821_v14 = vpop.permute.xlu1 %593 }
  0xd1   : > { %4010 = vst [vmem:[#allocation32_spill] sm:$0xff] %v2821_v14 }
  0xd2   : > { %v2823_v22 = vpop.permute.xlu0 %591 }
  0xd3   : > { %4011 = vst [vmem:[#allocation33_spill] sm:$0xff] %v2823_v22 }
  0xd4   : > { %975 = vrot.lane.b32.xlu2 %v2521_v47, %s2359_s23 }
  0xd6   : > { %973 = vrot.lane.b32.xlu1 %v2480_v31, %s2359_s23  ;;  %v2829_v37 = vpop.permute.xlu2 %683 }
  0xd7   : > { %4012 = vst [vmem:[#allocation34_spill] sm:$0xff] %v2829_v37  ;;  %v1286_v37 = vld [vmem:[#allocation2 + $0x61] sm:$0xff] }
  0xd8   : > { %971 = vrot.lane.b32.xlu0 %v2486_v34, %s2359_s23  ;;  %v2833_v20 = vpop.permute.xlu1 %599 }
  0xd9   : > { %4013 = vst [vmem:[#allocation35_spill] sm:$0xff] %v2833_v20 }
  0xda   : > { %v2835_v24 = vpop.permute.xlu0 %597 }
  0xdb   : > { %4014 = vst [vmem:[#allocation36_spill] sm:$0xff] %v2835_v24  ;;  %v1298_v24 = vld [vmem:[#allocation2 + $0xf1] sm:$0xff] }
  0xdc   : > { %981 = vrot.lane.b32.xlu2 %v2545_v55, %s2359_s23 }
  0xde   : > { %979 = vrot.lane.b32.xlu1 %v2508_v42, %s2359_s23  ;;  %v2841_v11 = vpop.permute.xlu2 %689 }
  0xdf   : > { %4015 = vst [vmem:[#allocation37_spill] sm:$0xff] %v2841_v11  ;;  %v1296_v11 = vld [vmem:[#allocation2 + $0xd9] sm:$0xff] }
  0xe0   : > { %977 = vrot.lane.b32.xlu0 %v2514_v45, %s2359_s23  ;;  %v2845_v31 = vpop.permute.xlu1 %605 }
  0xe1   : > { %4016 = vst [vmem:[#allocation38_spill] sm:$0xff] %v2845_v31 }
  0xe2   : > { %v2847_v47 = vpop.permute.xlu0 %603 }
  0xe3   : > { %4017 = vst [vmem:[#allocation39_spill] sm:$0xff] %v2847_v47 }
  0xe4   : > { %987 = vrot.lane.b32.xlu2 %v2565_v62, %s2359_s23  ;;  %v404_v62 = vld [vmem:[%s2867_s28 + $0x10] sm:$0x3] }
  0xe5   : > { %411 = vst.msk [vmem:[#allocation2 + $0x190] sm:$0x3] %vm355_vm1, %v404_v62 }
  0xe6   : > { %985 = vrot.lane.b32.xlu1 %v2534_v52, %s2359_s23  ;;  %v2853_v34 = vpop.permute.xlu2 %695  ;;  %v402_v52 = vld [vmem:[%s2867_s28] sm:$0xff] }
  0xe7   : > { %4018 = vst [vmem:[#allocation40_spill] sm:$0xff] %v2853_v34  ;;  %v1307_v34 = vld [vmem:[#allocation2 + $0x159] sm:$0xff] }
  0xe8   : > { %983 = vrot.lane.b32.xlu0 %v2539_v54, %s2359_s23  ;;  %v2857_v42 = vpop.permute.xlu1 %675  ;;  %v403_v54 = vld [vmem:[%s2867_s28 + $0x8] sm:$0xff]  ;;  %409 = vst.msk [vmem:[#allocation2 + $0x180] sm:$0xff] %vm352_vm0, %v402_v52 }
  0xe9   : > { %4019 = vst [vmem:[#allocation41_spill] sm:$0xff] %v2857_v42  ;;  %v1282_v42 = vld [vmem:[#allocation2 + $0x31] sm:$0xff] }
  0xea   : > { %v2860_v55 = vpop.permute.xlu0 %673  ;;  %410 = vst.msk [vmem:[#allocation2 + $0x188] sm:$0xff] %vm352_vm0, %v403_v54 }
  0xeb   : > { %4020 = vst [vmem:[#allocation42_spill] sm:$0xff] %v2860_v55 }
  0xec   : > { %993 = vrot.lane.b32.xlu2 %v2583_v4, %s2359_s23 }
  0xee   : > { %991 = vrot.lane.b32.xlu1 %v2556_v60, %s2359_s23  ;;  %v2871_v45 = vpop.permute.xlu2 %701 }
  0xf0   : > { %989 = vrot.lane.b32.xlu0 %v2560_v61, %s2359_s23  ;;  %v2878_v4 = vpop.permute.xlu1 %681 }
  0xf1   : > { %4021 = vst [vmem:[#allocation43_spill] sm:$0xff] %v2878_v4  ;;  %v2935_v62 = vld [vmem:[#allocation2 + $0x181] sm:$0xff]  ;;  %v1288_v4 = vld [vmem:[#allocation2 + $0x79] sm:$0xff] }
  0xf2   : > { %v2882_v55 = vpop.permute.xlu0 %679  ;;  %v3072_v33 = vld [vmem:[#allocation2 + $0x182] sm:$0xff] }
  0xf3   : > { %4022 = vst [vmem:[#allocation44_spill] sm:$0xff] %v2882_v55 }
  0xf4   : > { %999 = vrot.lane.b32.xlu2 %v2595_v7, %s2359_s23 }
  0xf6   : > { %997 = vrot.lane.b32.xlu1 %v2575_v2, %s2359_s23  ;;  %v2889_v60 = vpop.permute.xlu2 %707 }
  0xf7   : > { %4023 = vst [vmem:[#allocation45_spill] sm:$0xff] %v2889_v60 }
  0xf8   : > { %995 = vrot.lane.b32.xlu0 %v2579_v3, %s2359_s23  ;;  %v2893_v61 = vpop.permute.xlu1 %687 }
  0xf9   : > { %4024 = vst [vmem:[#allocation46_spill] sm:$0xff] %v2893_v61  ;;  %v1293_v61 = vld [vmem:[#allocation2 + $0xb1] sm:$0xff] }
  0xfa   : > { %v2895_v52 = vpop.permute.xlu0 %685 }
  0xfb   : > { %4025 = vst [vmem:[#allocation47_spill] sm:$0xff] %v2895_v52 }
  0xfc   : > { %1005 = vrot.lane.b32.xlu2 %v2607_v10, %s2359_s23 }
  0xfe   : > { %1003 = vrot.lane.b32.xlu1 %v2589_v5, %s2359_s23  ;;  %v2901_v54 = vpop.permute.xlu2 %713 }
  0xff   : > { %4026 = vst [vmem:[#allocation48_spill] sm:$0xff] %v2901_v54  ;;  %v1283_v54 = vld [vmem:[#allocation2 + $0x39] sm:$0xff] }
 0x100   : > { %1001 = vrot.lane.b32.xlu0 %v2591_v6, %s2359_s23  ;;  %v2905_v2 = vpop.permute.xlu1 %693 }
 0x101   : > { %4027 = vst [vmem:[#allocation49_spill] sm:$0xff] %v2905_v2  ;;  %v1305_v2 = vld [vmem:[#allocation2 + $0x141] sm:$0xff] }
 0x102   : > { %v2907_v7 = vpop.permute.xlu0 %691 }
 0x103   : > { %4028 = vst [vmem:[#allocation50_spill] sm:$0xff] %v2907_v7  ;;  %v1295_v7 = vld [vmem:[#allocation2 + $0xc9] sm:$0xff] }
 0x104   : > { %1011 = vrot.lane.b32.xlu2 %v2619_v15, %s2359_s23  ;;  %v2931_v15 = vld [vmem:[#allocation2 + $0x189] sm:$0xff] }
 0x106   : > { %1009 = vrot.lane.b32.xlu1 %v2601_v8, %s2359_s23  ;;  %v2913_v3 = vpop.permute.xlu2 %719 }
 0x107   : > { %4029 = vst [vmem:[#allocation51_spill] sm:$0xff] %v2913_v3  ;;  %v1289_v3 = vld [vmem:[#allocation2 + $0x81] sm:$0xff] }
 0x108   : > { %1007 = vrot.lane.b32.xlu0 %v2603_v9, %s2359_s23  ;;  %v2917_v5 = vpop.permute.xlu1 %699 }
 0x109   : > { %4030 = vst [vmem:[#allocation52_spill] sm:$0xff] %v2917_v5 }
 0x10a   : > { %v2919_v10 = vpop.permute.xlu0 %697 }
 0x10b   : > { %4031 = vst [vmem:[#allocation53_spill] sm:$0xff] %v2919_v10 }
 0x10c   : > { %1017 = vrot.lane.b32.xlu2 %v2628_v18, %s2359_s23 }
 0x10e   : > { %1015 = vrot.lane.b32.xlu1 %v2613_v12, %s2359_s23  ;;  %v2925_v6 = vpop.permute.xlu2 %725 }
 0x10f   : > { %4032 = vst [vmem:[#allocation54_spill] sm:$0xff] %v2925_v6 }
 0x110   : > { %1013 = vrot.lane.b32.xlu0 %v2615_v13, %s2359_s23  ;;  %v2929_v8 = vpop.permute.xlu1 %705 }
 0x111   : > { %4033 = vst [vmem:[#allocation55_spill] sm:$0xff] %v2929_v8 }
 0x112   : > { %v2933_v9 = vpop.permute.xlu0 %703 }
 0x113   : > { %4034 = vst [vmem:[#allocation56_spill] sm:$0xff] %v2933_v9 }
 0x114   : > { %1023 = vrot.lane.b32.xlu2 %v2931_v15, %s2359_s23 }
 0x116   : > { %1021 = vrot.lane.b32.xlu1 %v2935_v62, %s2359_s23  ;;  %v2941_v12 = vpop.permute.xlu2 %731 }
 0x117   : > { %4035 = vst [vmem:[#allocation57_spill] sm:$0xff] %v2941_v12 }
 0x118   : > { %1019 = vrot.lane.b32.xlu0 %v2625_v17, %s2359_s23  ;;  %v2945_v13 = vpop.permute.xlu1 %711 }
 0x119   : > { %4036 = vst [vmem:[#allocation58_spill] sm:$0xff] %v2945_v13  ;;  %v1284_v13 = vld [vmem:[#allocation2 + $0x49] sm:$0xff] }
 0x11a   : > { %v2947_v18 = vpop.permute.xlu0 %709 }
 0x11b   : > { %4037 = vst [vmem:[#allocation59_spill] sm:$0xff] %v2947_v18 }
 0x11c   : > { %1093 = vrot.lane.b32.xlu2 %v2651_v27, %s2360_s24 }
 0x11e   : > { %1091 = vrot.lane.b32.xlu1 %v2634_v19, %s2360_s24  ;;  %v2953_v9 = vpop.permute.xlu2 %963 }
 0x11f   : > { %4038 = vst [vmem:[#allocation60_spill] sm:$0xff] %v2953_v9 }
 0x120   : > { %1089 = vrot.lane.b32.xlu0 %v2636_v21, %s2360_s24  ;;  %v2957_v8 = vpop.permute.xlu1 %717 }
 0x121   : > { %4039 = vst [vmem:[#allocation61_spill] sm:$0xff] %v2957_v8 }
 0x122   : > { %v2959_v60 = vpop.permute.xlu0 %715 }
 0x123   : > { %4040 = vst [vmem:[#allocation62_spill] sm:$0xff] %v2959_v60 }
 0x124   : > { %1099 = vrot.lane.b32.xlu2 %v2665_v32, %s2360_s24 }
 0x126   : > { %1097 = vrot.lane.b32.xlu1 %v2645_v25, %s2360_s24  ;;  %v2965_v17 = vpop.permute.xlu2 %969 }
 0x127   : > { %4041 = vst [vmem:[#allocation63_spill] sm:$0xff] %v2965_v17  ;;  %v1340_v17 = vld [vmem:[#allocation2 + $0x16a] sm:$0xff] }
 0x128   : > { %1095 = vrot.lane.b32.xlu0 %v2647_v26, %s2360_s24  ;;  %v2969_v19 = vpop.permute.xlu1 %723 }
 0x129   : > { %4042 = vst [vmem:[#allocation64_spill] sm:$0xff] %v2969_v19 }
 0x12a   : > { %v2971_v27 = vpop.permute.xlu0 %721 }
 0x12b   : > { %4043 = vst [vmem:[#allocation65_spill] sm:$0xff] %v2971_v27  ;;  %v1292_v27 = vld [vmem:[#allocation2 + $0xa9] sm:$0xff] }
 0x12c   : > { %1105 = vrot.lane.b32.xlu2 %v2679_v38, %s2360_s24 }
 0x12e   : > { %1103 = vrot.lane.b32.xlu1 %v2659_v29, %s2360_s24  ;;  %v2977_v21 = vpop.permute.xlu2 %975 }
 0x130   : > { %1101 = vrot.lane.b32.xlu0 %v2661_v30, %s2360_s24  ;;  %v2981_v25 = vpop.permute.xlu1 %729 }
 0x131   : > { %4044 = vst [vmem:[#allocation66_spill] sm:$0xff] %v2981_v25 }
 0x132   : > { %v2983_v32 = vpop.permute.xlu0 %727 }
 0x133   : > { %4045 = vst [vmem:[#allocation67_spill] sm:$0xff] %v2983_v32  ;;  %v407_v32 = vld [vmem:[%s2867_s28 + $0x28] sm:$0x3] }
 0x134   : > { %1111 = vrot.lane.b32.xlu2 %v2697_v46, %s2360_s24  ;;  %414 = vst.msk [vmem:[#allocation2 + $0x1a8] sm:$0x3] %vm355_vm1, %v407_v32  ;;  %v1304_v32 = vld [vmem:[#allocation2 + $0x139] sm:$0xff] }
 0x136   : > { %1109 = vrot.lane.b32.xlu1 %v2673_v35, %s2360_s24  ;;  %v2989_v26 = vpop.permute.xlu2 %981 }
 0x138   : > { %1107 = vrot.lane.b32.xlu0 %v2675_v36, %s2360_s24  ;;  %v2993_v29 = vpop.permute.xlu1 %961 }
 0x139   : > { %4046 = vst [vmem:[#allocation68_spill] sm:$0xff] %v2993_v29 }
 0x13a   : > { %v2995_v38 = vpop.permute.xlu0 %733 }
 0x13b   : > { %4047 = vst [vmem:[#allocation69_spill] sm:$0xff] %v2995_v38 }
 0x13c   : > { %1117 = vrot.lane.b32.xlu2 %v2715_v56, %s2360_s24 }
 0x13e   : > { %1115 = vrot.lane.b32.xlu1 %v2689_v41, %s2360_s24  ;;  %v3001_v30 = vpop.permute.xlu2 %987 }
 0x140   : > { %1113 = vrot.lane.b32.xlu0 %v2693_v44, %s2360_s24  ;;  %v3005_v35 = vpop.permute.xlu1 %967 }
 0x141   : > { %4048 = vst [vmem:[#allocation70_spill] sm:$0xff] %v3005_v35 }
 0x142   : > { %v3007_v46 = vpop.permute.xlu0 %965 }
 0x143   : > { %4049 = vst [vmem:[#allocation71_spill] sm:$0xff] %v3007_v46 }
 0x144   : > { %1123 = vrot.lane.b32.xlu2 %v2733_v1, %s2360_s24 }
 0x146   : > { %1121 = vrot.lane.b32.xlu1 %v2707_v50, %s2360_s24  ;;  %v3013_v36 = vpop.permute.xlu2 %993 }
 0x147   : > { %4050 = vst [vmem:[#allocation72_spill] sm:$0xff] %v3013_v36  ;;  %v405_v36 = vld [vmem:[%s2867_s28 + $0x18] sm:$0xff] }
 0x148   : > { %1119 = vrot.lane.b32.xlu0 %v2711_v53, %s2360_s24  ;;  %v3017_v41 = vpop.permute.xlu1 %973  ;;  %412 = vst.msk [vmem:[#allocation2 + $0x198] sm:$0xff] %vm352_vm0, %v405_v36  ;;  %v1303_v36 = vld [vmem:[#allocation2 + $0x129] sm:$0xff] }
 0x14a   : > { %v3019_v56 = vpop.permute.xlu0 %971 }
 0x14b   : > { %4051 = vst [vmem:[#allocation73_spill] sm:$0xff] %v3019_v56  ;;  %v1325_v56 = vld [vmem:[#allocation2 + $0xb2] sm:$0xff] }
 0x14c   : > { %1129 = vrot.lane.b32.xlu2 %v2751_v40, %s2360_s24 }
 0x14e   : > { %1127 = vrot.lane.b32.xlu1 %v2725_v59, %s2360_s24  ;;  %v3025_v44 = vpop.permute.xlu2 %999 }
 0x14f   : > { %4052 = vst [vmem:[#allocation74_spill] sm:$0xff] %v3025_v44 }
 0x150   : > { %1125 = vrot.lane.b32.xlu0 %v2729_v0, %s2360_s24  ;;  %v3029_v50 = vpop.permute.xlu1 %979 }
 0x152   : > { %v3031_v1 = vpop.permute.xlu0 %977 }
 0x153   : > { %4053 = vst [vmem:[#allocation75_spill] sm:$0xff] %v3031_v1  ;;  %v1252_v1 = vld [vmem:[#allocation2 + $0x48] sm:$0xff] }
 0x154   : > { %1135 = vrot.lane.b32.xlu2 %v2769_v58, %s2360_s24 }
 0x156   : > { %1133 = vrot.lane.b32.xlu1 %v2743_v43, %s2360_s24  ;;  %v3037_v53 = vpop.permute.xlu2 %1005 }
 0x157   : > { %4054 = vst [vmem:[#allocation76_spill] sm:$0xff] %v3037_v53 }
 0x158   : > { %1131 = vrot.lane.b32.xlu0 %v2747_v57, %s2360_s24  ;;  %v3041_v40 = vpop.permute.xlu1 %985 }
 0x15a   : > { %v3043_v59 = vpop.permute.xlu0 %983 }
 0x15c   : > { %1141 = vrot.lane.b32.xlu2 %v2787_v28, %s2360_s24  ;;  %v4055_v28 = vld [vmem:[#allocation24_spill] sm:$0xff] }
 0x15e   : > { %1139 = vrot.lane.b32.xlu1 %v2761_v16, %s2360_s24  ;;  %v3049_v0 = vpop.permute.xlu2 %1011 }
 0x160   : > { %1137 = vrot.lane.b32.xlu0 %v2765_v63, %s2360_s24  ;;  %v3053_v43 = vpop.permute.xlu1 %991  ;;  %v3069_v63 = vld [vmem:[#allocation2 + $0x18a] sm:$0xff] }
 0x162   : > { %v3055_v58 = vpop.permute.xlu0 %989 }
 0x164   : > { %1147 = vrot.lane.b32.xlu2 %v2801_v48, %s2360_s24 }
 0x166   : > { %1145 = vrot.lane.b32.xlu1 %v2779_v51, %s2360_s24  ;;  %v3061_v57 = vpop.permute.xlu2 %1017 }
 0x168   : > { %1143 = vrot.lane.b32.xlu0 %v4055_v28, %s2360_s24  ;;  %v3065_v16 = vpop.permute.xlu1 %997 }
 0x169   : > { %4056 = vst [vmem:[#allocation24_spill] sm:$0xff] %v3065_v16 }
 0x16a   : > { %v3067_v18 = vpop.permute.xlu0 %995 }
 0x16b   : > { %4057 = vst [vmem:[#allocation77_spill] sm:$0xff] %v3067_v18  ;;  %v1319_v18 = vld [vmem:[#allocation2 + $0x6a] sm:$0xff] }
 0x16c   : > { %1378 = vrot.lane.b32.xlu2 %v1282_v42, %s2359_s23 }
 0x16e   : > { %1151 = vrot.lane.b32.xlu1 %v3069_v63, %s2360_s24  ;;  %v3076_v51 = vpop.permute.xlu2 %1023 }
 0x170   : > { %1149 = vrot.lane.b32.xlu0 %v3072_v33, %s2360_s24  ;;  %v3080_v28 = vpop.permute.xlu1 %1003 }
 0x171   : > { %4058 = vst [vmem:[#allocation78_spill] sm:$0xff] %v3080_v28 }
 0x172   : > { %v3082_v55 = vpop.permute.xlu0 %1001 }
 0x173   : > { %4059 = vst [vmem:[#allocation79_spill] sm:$0xff] %v3082_v55 }
 0x174   : > { %1384 = vrot.lane.b32.xlu2 %v1285_v23, %s2359_s23 }
 0x176   : > { %1382 = vrot.lane.b32.xlu1 %v1284_v13, %s2359_s23  ;;  %v3086_v42 = vpop.permute.xlu2 %1093  ;;  %v1291_v13 = vld [vmem:[#allocation2 + $0x99] sm:$0xff] }
 0x177   : > { %4060 = vst [vmem:[#allocation80_spill] sm:$0xff] %v3086_v42 }
 0x178   : > { %1380 = vrot.lane.b32.xlu0 %v1283_v54, %s2359_s23  ;;  %v3089_v39 = vpop.permute.xlu1 %1009  ;;  %v1290_v54 = vld [vmem:[#allocation2 + $0x91] sm:$0xff] }
 0x17a   : > { %v3091_v60 = vpop.permute.xlu0 %1007 }
 0x17c   : > { %1390 = vrot.lane.b32.xlu2 %v1288_v4, %s2359_s23  ;;  %v1294_v4 = vld [vmem:[#allocation2 + $0xc1] sm:$0xff] }
 0x17e   : > { %1388 = vrot.lane.b32.xlu1 %v1287_v49, %s2359_s23  ;;  %v3095_v52 = vpop.permute.xlu2 %1099 }
 0x17f   : > { %4061 = vst [vmem:[#allocation81_spill] sm:$0xff] %v3095_v52 }
 0x180   : > { %1386 = vrot.lane.b32.xlu0 %v1286_v37, %s2359_s23  ;;  %v3098_v23 = vpop.permute.xlu1 %1015 }
 0x182   : > { %v3100_v8 = vpop.permute.xlu0 %1013 }
 0x184   : > { %1396 = vrot.lane.b32.xlu2 %v1291_v13, %s2359_s23 }
 0x186   : > { %1394 = vrot.lane.b32.xlu1 %v1290_v54, %s2359_s23  ;;  %v3104_v22 = vpop.permute.xlu2 %1105 }
 0x187   : > { %4062 = vst [vmem:[#allocation82_spill] sm:$0xff] %v3104_v22 }
 0x188   : > { %1392 = vrot.lane.b32.xlu0 %v1289_v3, %s2359_s23  ;;  %v3107_v49 = vpop.permute.xlu1 %1021  ;;  %v1297_v3 = vld [vmem:[#allocation2 + $0xe1] sm:$0xff] }
 0x18a   : > { %v3109_v37 = vpop.permute.xlu0 %1019 }
 0x18c   : > { %1402 = vrot.lane.b32.xlu2 %v1294_v4, %s2359_s23 }
 0x18e   : > { %1400 = vrot.lane.b32.xlu1 %v1293_v61, %s2359_s23  ;;  %v3113_v13 = vpop.permute.xlu2 %1111  ;;  %v406_v61 = vld [vmem:[%s2867_s28 + $0x20] sm:$0xff] }
 0x18f   : > { %413 = vst.msk [vmem:[#allocation2 + $0x1a0] sm:$0xff] %vm352_vm0, %v406_v61  ;;  %v1302_v61 = vld [vmem:[#allocation2 + $0x121] sm:$0xff] }
 0x190   : > { %1398 = vrot.lane.b32.xlu0 %v1292_v27, %s2359_s23  ;;  %v3116_v54 = vpop.permute.xlu1 %1091  ;;  %v1300_v27 = vld [vmem:[#allocation2 + $0x109] sm:$0xff] }
 0x191   : > { %4063 = vst [vmem:[#allocation83_spill] sm:$0xff] %v3116_v54  ;;  %v1301_v54 = vld [vmem:[#allocation2 + $0x111] sm:$0xff] }
 0x192   : > { %v3118_v14 = vpop.permute.xlu0 %1089 }
 0x193   : > { %4064 = vst [vmem:[#allocation84_spill] sm:$0xff] %v3118_v14  ;;  %v1318_v14 = vld [vmem:[#allocation2 + $0x62] sm:$0xff] }
 0x194   : > { %1408 = vrot.lane.b32.xlu2 %v1297_v3, %s2359_s23  ;;  %v1299_v3 = vld [vmem:[#allocation2 + $0xf9] sm:$0xff] }
 0x196   : > { %1406 = vrot.lane.b32.xlu1 %v1296_v11, %s2359_s23  ;;  %v3122_v4 = vpop.permute.xlu2 %1117  ;;  %v1345_v47 = vld [vmem:[#allocation2 + $0x1a2] sm:$0xff] }
 0x198   : > { %1404 = vrot.lane.b32.xlu0 %v1295_v7, %s2359_s23  ;;  %v3127_v19 = vpop.permute.xlu1 %1097 }
 0x199   : > { %4065 = vst [vmem:[#allocation85_spill] sm:$0xff] %v3127_v19 }
 0x19a   : > { %v3131_v6 = vpop.permute.xlu0 %1095 }
 0x19b   : > { %4066 = vst [vmem:[#allocation86_spill] sm:$0xff] %v3131_v6  ;;  %v1321_v6 = vld [vmem:[#allocation2 + $0x82] sm:$0xff] }
 0x19c   : > { %1414 = vrot.lane.b32.xlu2 %v1300_v27, %s2359_s23 }
 0x19e   : > { %1412 = vrot.lane.b32.xlu1 %v1299_v3, %s2359_s23  ;;  %v3135_v11 = vpop.permute.xlu2 %1123 }
 0x19f   : > { %4067 = vst [vmem:[#allocation87_spill] sm:$0xff] %v3135_v11 }
 0x1a0   : > { %1410 = vrot.lane.b32.xlu0 %v1298_v24, %s2359_s23  ;;  %v3139_v7 = vpop.permute.xlu1 %1103  ;;  %v1306_v24 = vld [vmem:[#allocation2 + $0x151] sm:$0xff] }
 0x1a2   : > { %v3142_v20 = vpop.permute.xlu0 %1101 }
 0x1a4   : > { %1420 = vrot.lane.b32.xlu2 %v1303_v36, %s2359_s23 }
 0x1a6   : > { %1418 = vrot.lane.b32.xlu1 %v1302_v61, %s2359_s23  ;;  %v3146_v27 = vpop.permute.xlu2 %1129  ;;  %v1309_v61 = vld [vmem:[#allocation2 + $0x171] sm:$0xff] }
 0x1a7   : > { %4068 = vst [vmem:[#allocation88_spill] sm:$0xff] %v3146_v27 }
 0x1a8   : > { %1416 = vrot.lane.b32.xlu0 %v1301_v54, %s2359_s23  ;;  %v3149_v3 = vpop.permute.xlu1 %1109  ;;  %v1308_v54 = vld [vmem:[#allocation2 + $0x169] sm:$0xff] }
 0x1aa   : > { %v3151_v9 = vpop.permute.xlu0 %1107 }
 0x1ac   : > { %1426 = vrot.lane.b32.xlu2 %v1306_v24, %s2359_s23  ;;  %v1312_v24 = vld [vmem:[#allocation2 + $0x199] sm:$0xff] }
 0x1ae   : > { %1424 = vrot.lane.b32.xlu1 %v1305_v2, %s2359_s23  ;;  %v3155_v42 = vpop.permute.xlu2 %1135 }
 0x1b0   : > { %1422 = vrot.lane.b32.xlu0 %v1304_v32, %s2359_s23  ;;  %v3158_v36 = vpop.permute.xlu1 %1115 }
 0x1b2   : > { %v3160_v46 = vpop.permute.xlu0 %1113 }
 0x1b4   : > { %1432 = vrot.lane.b32.xlu2 %v1309_v61, %s2359_s23 }
 0x1b6   : > { %1430 = vrot.lane.b32.xlu1 %v1308_v54, %s2359_s23  ;;  %v3164_v16 = vpop.permute.xlu2 %1141  ;;  %v1315_v54 = vld [vmem:[#allocation2 + $0x3a] sm:$0xff] }
 0x1b8   : > { %1428 = vrot.lane.b32.xlu0 %v1307_v34, %s2359_s23  ;;  %v3167_v2 = vpop.permute.xlu1 %1121  ;;  %v1314_v34 = vld [vmem:[#allocation2 + $0x32] sm:$0xff] }
 0x1b9   : > { %4069 = vst [vmem:[#allocation89_spill] sm:$0xff] %v3167_v2  ;;  %v1313_v2 = vld [vmem:[#allocation2 + $0x1a1] sm:$0xff] }
 0x1ba   : > { %v3169_v10 = vpop.permute.xlu0 %1119 }
 0x1bc   : > { %1438 = vrot.lane.b32.xlu2 %v1312_v24, %s2359_s23 }
 0x1be   : > { %1436 = vrot.lane.b32.xlu1 %v2931_v15, %s2359_s23  ;;  %v3174_v32 = vpop.permute.xlu2 %1147 }
 0x1c0   : > { %1434 = vrot.lane.b32.xlu0 %v2935_v62, %s2359_s23  ;;  %v3178_v61 = vpop.permute.xlu1 %1127  ;;  %v1317_v62 = vld [vmem:[#allocation2 + $0x52] sm:$0xff] }
 0x1c1   : > { %4070 = vst [vmem:[#allocation90_spill] sm:$0xff] %v3178_v61  ;;  %v1316_v61 = vld [vmem:[#allocation2 + $0x4a] sm:$0xff] }
 0x1c2   : > { %v3180_v44 = vpop.permute.xlu0 %1125 }
 0x1c3   : > { %4071 = vst [vmem:[#allocation91_spill] sm:$0xff] %v3180_v44 }
 0x1c4   : > { %1508 = vrot.lane.b32.xlu2 %v1315_v54, %s2360_s24 }
 0x1c6   : > { %1506 = vrot.lane.b32.xlu1 %v1314_v34, %s2360_s24  ;;  %v3184_v24 = vpop.permute.xlu2 %1378  ;;  %v1329_v34 = vld [vmem:[#allocation2 + $0xe2] sm:$0xff] }
 0x1c8   : > { %1440 = vrot.lane.b32.xlu0 %v1313_v2, %s2359_s23  ;;  %v3187_v15 = vpop.permute.xlu1 %1133  ;;  %v1320_v2 = vld [vmem:[#allocation2 + $0x7a] sm:$0xff] }
 0x1c9   : > { %4072 = vst [vmem:[#allocation92_spill] sm:$0xff] %v3187_v15 }
 0x1ca   : > { %v3189_v29 = vpop.permute.xlu0 %1131 }
 0x1cb   : > { %4073 = vst [vmem:[#allocation93_spill] sm:$0xff] %v3189_v29  ;;  %v1339_v29 = vld [vmem:[#allocation2 + $0x15a] sm:$0xff] }
 0x1cc   : > { %1514 = vrot.lane.b32.xlu2 %v1318_v14, %s2360_s24 }
 0x1ce   : > { %1512 = vrot.lane.b32.xlu1 %v1317_v62, %s2360_s24  ;;  %v3193_v44 = vpop.permute.xlu2 %1384  ;;  %v1344_v62 = vld [vmem:[#allocation2 + $0x19a] sm:$0xff] }
 0x1d0   : > { %1510 = vrot.lane.b32.xlu0 %v1316_v61, %s2360_s24  ;;  %v3196_v54 = vpop.permute.xlu1 %1139  ;;  %v1328_v61 = vld [vmem:[#allocation2 + $0xda] sm:$0xff] }
 0x1d2   : > { %v3198_v11 = vpop.permute.xlu0 %1137 }
 0x1d4   : > { %1536 = vrot.lane.b32.xlu2 %v1329_v34, %s2360_s24 }
 0x1d6   : > { %1518 = vrot.lane.b32.xlu1 %v1320_v2, %s2360_s24  ;;  %v3202_v25 = vpop.permute.xlu2 %1390  ;;  %v1326_v2 = vld [vmem:[#allocation2 + $0xc2] sm:$0xff] }
 0x1d8   : > { %1516 = vrot.lane.b32.xlu0 %v1319_v18, %s2360_s24  ;;  %v3205_v14 = vpop.permute.xlu1 %1145  ;;  %v1327_v18 = vld [vmem:[#allocation2 + $0xca] sm:$0xff] }
 0x1da   : > { %v3207_v12 = vpop.permute.xlu0 %1143 }
 0x1dc   : > { %1566 = vrot.lane.b32.xlu2 %v1344_v62, %s2360_s24 }
 0x1de   : > { %1534 = vrot.lane.b32.xlu1 %v1328_v61, %s2360_s24  ;;  %v3211_v38 = vpop.permute.xlu2 %1396 }
 0x1e0   : > { %1568 = vrot.lane.b32.xlu0 %v1345_v47, %s2360_s24  ;;  %v1152_v34 = vpop.permute.xlu1 %1151 }
 0x1e2   : > { %v3214_v31 = vpop.permute.xlu0 %1149 }
 0x1e4   : > { %1530 = vrot.lane.b32.xlu2 %v1326_v2, %s2360_s24 }
 0x1e6   : > { %1564 = vrot.lane.b32.xlu1 %v3069_v63, %s2360_s24  ;;  %v3219_v52 = vpop.permute.xlu2 %1402  ;;  %v1323_v63 = vld [vmem:[#allocation2 + $0x9a] sm:$0xff] }
 0x1e8   : > { %1532 = vrot.lane.b32.xlu0 %v1327_v18, %s2360_s24  ;;  %v3222_v62 = vpop.permute.xlu1 %1382  ;;  %v1324_v18 = vld [vmem:[#allocation2 + $0xaa] sm:$0xff] }
 0x1ea   : > { %v1381_v61 = vpop.permute.xlu0 %1380 }
 0x1ec   : > { %1560 = vrot.lane.b32.xlu2 %v2801_v48, %s2360_s24 }
 0x1ee   : > { %1528 = vrot.lane.b32.xlu1 %v1325_v56, %s2360_s24  ;;  %v3227_v47 = vpop.permute.xlu2 %1408  ;;  %v1338_v56 = vld [vmem:[#allocation2 + $0x152] sm:$0xff] }
 0x1f0   : > { %1562 = vrot.lane.b32.xlu0 %v3072_v33, %s2360_s24  ;;  %v3231_v2 = vpop.permute.xlu1 %1388  ;;  %v1322_v33 = vld [vmem:[#allocation2 + $0x92] sm:$0xff] }
 0x1f2   : > { %v1387_v19 = vpop.permute.xlu0 %1386 }
 0x1f4   : > { %1524 = vrot.lane.b32.xlu2 %v1323_v63, %s2360_s24  ;;  %v1336_v63 = vld [vmem:[#allocation2 + $0x13a] sm:$0xff] }
 0x1f6   : > { %1558 = vrot.lane.b32.xlu1 %v1340_v17, %s2360_s24  ;;  %v3235_v15 = vpop.permute.xlu2 %1414 }
 0x1f7   : > { %4074 = vst [vmem:[#allocation94_spill] sm:$0xff] %v3235_v15 }
 0x1f8   : > { %1526 = vrot.lane.b32.xlu0 %v1324_v18, %s2360_s24  ;;  %v3238_v48 = vpop.permute.xlu1 %1394  ;;  %v1337_v18 = vld [vmem:[#allocation2 + $0x142] sm:$0xff] }
 0x1fa   : > { %v3240_v53 = vpop.permute.xlu0 %1392 }
 0x1fb   : > { %4075 = vst [vmem:[#allocation95_spill] sm:$0xff] %v3240_v53 }
 0x1fc   : > { %1554 = vrot.lane.b32.xlu2 %v1338_v56, %s2360_s24 }
 0x1fe   : > { %1522 = vrot.lane.b32.xlu1 %v1322_v33, %s2360_s24  ;;  %v3244_v28 = vpop.permute.xlu2 %1420  ;;  %v3258_v33 = vld [vmem:[#allocation2 + $0x188] sm:$0xff] }
 0x1ff   : > { %4076 = vst [vmem:[#allocation96_spill] sm:$0xff] %v3244_v28  ;;  %v1216_v53 = vsel %vm352_vm0, %v3258_v33, %v3076_v51  ;;  %v431_v51 = vld [vmem:[#allocation2 + $0xc0] sm:$0xff] }
 0x200   : > { %1556 = vrot.lane.b32.xlu0 %v1339_v29, %s2360_s24  ;;  %v3247_v17 = vpop.permute.xlu1 %1400  ;;  %v1335_v29 = vld [vmem:[#allocation2 + $0x12a] sm:$0xff] }
 0x202   : > { %v3249_v15 = vpop.permute.xlu0 %1398 }
 0x204   : > { %1550 = vrot.lane.b32.xlu2 %v1336_v63, %s2360_s24  ;;  %v432_v63 = vld [vmem:[#allocation2 + $0xc8] sm:$0xff] }
 0x206   : > { %1552 = vrot.lane.b32.xlu1 %v1337_v18, %s2360_s24  ;;  %v3253_v35 = vpop.permute.xlu2 %1426  ;;  %v1248_v18 = vsel %vm799_vm2, %v1216_v53, %v1152_v34 }
 0x207   : > { %4077 = vst [vmem:[#allocation97_spill] sm:$0xff] %v3253_v35 }
 0x208   : > { %1520 = vrot.lane.b32.xlu0 %v1321_v6, %s2360_s24  ;;  %v3256_v56 = vpop.permute.xlu1 %1406  ;;  %v1200_v6 = vsel %vm352_vm0, %v432_v63, %v3053_v43 }
 0x209   : > { %v1232_v55 = vsel %vm799_vm2, %v1200_v6, %v3169_v10  ;;  %v1251_v10 = vld [vmem:[#allocation2 + $0x38] sm:$0xff] }
 0x20a   : > { %v3260_v28 = vpop.permute.xlu0 %1404 }
 0x20c   : > { %1548 = vrot.lane.b32.xlu2 %v1335_v29, %s2360_s24  ;;  %v1199_v29 = vsel %vm352_vm0, %v431_v51, %v3055_v58 }
 0x20d   : > { %v1231_v43 = vsel %vm799_vm2, %v1199_v29, %v3122_v4 }
 0x20e   : > { %1760 = vrot.lane.b32.xlu1 %v1248_v18, %s2361_s29  ;;  %v3270_v27 = vpop.permute.xlu2 %1432 }
 0x210   : > { %1728 = vrot.lane.b32.xlu0 %v1232_v55, %s2361_s29  ;;  %v3275_v5 = vpop.permute.xlu1 %1412  ;;  %v1603_v55 = vsel %vm352_vm0, %v1251_v10, %v1381_v61  ;;  %v1265_v61 = vld [vmem:[#allocation2 + $0xe0] sm:$0xff] }
 0x211   : > { %4078 = vst [vmem:[#allocation98_spill] sm:$0xff] %v3275_v5  ;;  %v1617_v10 = vsel %vm352_vm0, %v1265_v61, %v3227_v47 }
 0x212   : > { %v3279_v53 = vpop.permute.xlu0 %1410 }
 0x213   : > { %4079 = vst [vmem:[#allocation99_spill] sm:$0xff] %v3279_v53  ;;  %v1254_v53 = vld [vmem:[#allocation2 + $0x60] sm:$0xff] }
 0x214   : > { %1726 = vrot.lane.b32.xlu2 %v1231_v43, %s2361_s29  ;;  %v1606_v4 = vsel %vm352_vm0, %v1254_v53, %v1387_v19  ;;  %v3312_v53 = vld [vmem:[#allocation2 + $0x180] sm:$0xff] }
 0x216   : > { %v1439_v34 = vpop.permute.xlu2 %1438 }
 0x218   : > { %v3284_v63 = vpop.permute.xlu1 %1418 }
 0x219   : > { %4080 = vst [vmem:[#allocation100_spill] sm:$0xff] %v3284_v63 }
 0x21a   : > { %v3286_v18 = vpop.permute.xlu0 %1416 }
 0x21b   : > { %4081 = vst [vmem:[#allocation101_spill] sm:$0xff] %v3286_v18 }
 0x21e   : > { %v1509_v6 = vpop.permute.xlu2 %1508 }
 0x21f   : > { %v3290_v5 = vsel %vm799_vm2, %v1603_v55, %v1509_v6 }
 0x220   : > { %4082 = vst [vmem:[#allocation102_spill] sm:$0xff] %v3290_v5  ;;  %v3292_v58 = vpop.permute.xlu1 %1424 }
 0x221   : > { %4083 = vst [vmem:[#allocation103_spill] sm:$0xff] %v3292_v58  ;;  %v1253_v58 = vld [vmem:[#allocation2 + $0x50] sm:$0xff] }
 0x222   : > { %v3294_v51 = vpop.permute.xlu0 %1422 }
 0x226   : > { %v1515_v29 = vpop.permute.xlu2 %1514 }
 0x227   : > { %v3298_v43 = vsel %vm799_vm2, %v1606_v4, %v1515_v29  ;;  %v1250_v4 = vld [vmem:[#allocation2 + $0x30] sm:$0xff]  ;;  %v1215_v29 = vsel %vm352_vm0, %v3312_v53, %v3107_v49 }
 0x228   : > { %4084 = vst [vmem:[#allocation104_spill] sm:$0xff] %v3298_v43  ;;  %v3300_v63 = vpop.permute.xlu1 %1430  ;;  %v1247_v47 = vsel %vm799_vm2, %v1215_v29, %v3214_v31  ;;  %v1602_v61 = vsel %vm352_vm0, %v1250_v4, %v3184_v24  ;;  %v1280_v43 = vld [vmem:[#allocation2 + $0x198] sm:$0xff]  ;;  %v1605_v31 = vsel %vm352_vm0, %v1253_v58, %v3193_v44  ;;  %v1604_v4 = vsel %vm352_vm0, %v1252_v1, %v3222_v62 }
 0x229   : > { %v1632_v22 = vsel %vm352_vm0, %v1280_v43, %v1439_v34  ;;  %v1256_v34 = vld [vmem:[#allocation2 + $0x78] sm:$0xff] }
 0x22a   : > { %v3302_v18 = vpop.permute.xlu0 %1428  ;;  %v1333_v43 = vld [vmem:[#allocation2 + $0x112] sm:$0xff] }
 0x22e   : > { %v1537_v55 = vpop.permute.xlu2 %1536 }
 0x22f   : > { %v1649_v6 = vsel %vm799_vm2, %v1617_v10, %v1537_v55 }
 0x230   : > { %v3307_v5 = vpop.permute.xlu1 %1436  ;;  %1856 = vrot.lane.b32.xlu0 %v1649_v6, %s2362_s30 }
 0x232   : > { %v3310_v19 = vpop.permute.xlu0 %1434 }
 0x236   : > { %v1567_v35 = vpop.permute.xlu2 %1566 }
 0x237   : > { %v1664_v49 = vsel %vm799_vm2, %v1632_v22, %v1567_v35  ;;  %v1608_v22 = vsel %vm352_vm0, %v1256_v34, %v3202_v25 }
 0x238   : > { %v1507_v10 = vpop.permute.xlu1 %1506  ;;  %1758 = vrot.lane.b32.xlu0 %v1247_v47, %s2361_s29 }
 0x239   : > { %v3323_v55 = vsel %vm799_vm2, %v1602_v61, %v1507_v10  ;;  %v1255_v10 = vld [vmem:[#allocation2 + $0x68] sm:$0xff] }
 0x23a   : > { %v1441_v6 = vpop.permute.xlu0 %1440  ;;  %v1607_v58 = vsel %vm352_vm0, %v1255_v10, %v3231_v2 }
 0x240   : > { %v1513_v29 = vpop.permute.xlu1 %1512  ;;  %1886 = vrot.lane.b32.xlu0 %v1664_v49, %s2362_s30  ;;  %v3349_v49 = vld [vmem:[#allocation2 + $0xa8] sm:$0xff] }
 0x241   : > { %v3331_v24 = vsel %vm799_vm2, %v1605_v31, %v1513_v29  ;;  %v1264_v31 = vld [vmem:[#allocation2 + $0xd8] sm:$0xff]  ;;  %v1197_v25 = vsel %vm352_vm0, %v3349_v49, %v3041_v40 }
 0x242   : > { %v1511_v47 = vpop.permute.xlu0 %1510  ;;  %v1229_v29 = vsel %vm799_vm2, %v1197_v25, %v3160_v46  ;;  %v3377_v25 = vld [vmem:[#allocation2 + $0x158] sm:$0xff] }
 0x243   : > { %v3336_v61 = vsel %vm799_vm2, %v1604_v4, %v1511_v47  ;;  %v1281_v4 = vld [vmem:[#allocation2 + $0x1a0] sm:$0xff]  ;;  %v1616_v47 = vsel %vm352_vm0, %v1264_v31, %v3256_v56  ;;  %v3366_v56 = vld [vmem:[#allocation2 + $0x170] sm:$0xff] }
 0x244   : > { %v1334_v31 = vld [vmem:[#allocation2 + $0x122] sm:$0xff] }
 0x248   : > { %v1519_v35 = vpop.permute.xlu1 %1518  ;;  %1544 = vrot.lane.b32.xlu0 %v1333_v43, %s2360_s24  ;;  %v1633_v43 = vsel %vm352_vm0, %v1281_v4, %v1441_v6  ;;  %v1214_v6 = vsel %vm352_vm0, %v3366_v56, %v3109_v37 }
 0x249   : > { %v3342_v44 = vsel %vm799_vm2, %v1608_v22, %v1519_v35  ;;  %v1262_v22 = vld [vmem:[#allocation2 + $0xc0] sm:$0xff]  ;;  %v1531_v35 = vpop.permute.xlu2 %1530 }
 0x24a   : > { %v1517_v1 = vpop.permute.xlu0 %1516  ;;  %v1614_v46 = vsel %vm352_vm0, %v1262_v22, %v3219_v52  ;;  %v1212_v52 = vsel %vm352_vm0, %v3377_v25, %v3098_v23  ;;  %v1332_v22 = vld [vmem:[#allocation2 + $0x10a] sm:$0xff] }
 0x24b   : > { %v3347_v62 = vsel %vm799_vm2, %v1607_v58, %v1517_v1  ;;  %v1646_v58 = vsel %vm799_vm2, %v1614_v46, %v1531_v35  ;;  %v1246_v1 = vsel %vm799_vm2, %v1214_v6, %v3174_v32  ;;  %v1244_v37 = vsel %vm799_vm2, %v1212_v52, %v3207_v12  ;;  %v1277_v12 = vld [vmem:[#allocation2 + $0x170] sm:$0xff]  ;;  %v3407_v46 = vld [vmem:[#allocation2 + $0x98] sm:$0xff]  ;;  %v3413_v6 = vld [vmem:[#allocation2 + $0x168] sm:$0xff] }
 0x24c   : > { %v1631_v32 = vsel %vm352_vm0, %v3258_v33, %v3307_v5  ;;  %v1629_v5 = vsel %vm352_vm0, %v1277_v12, %v3270_v27  ;;  %v1263_v33 = vld [vmem:[#allocation2 + $0xc8] sm:$0xff]  ;;  %v1330_v35 = vld [vmem:[#allocation2 + $0xf2] sm:$0xff]  ;;  %v1196_v27 = vsel %vm352_vm0, %v3407_v46, %v3043_v59  ;;  %v3424_v59 = vld [vmem:[#allocation2 + $0x80] sm:$0xff] }
 0x250   : > { %v1535_v34 = vpop.permute.xlu1 %1534  ;;  %1722 = vrot.lane.b32.xlu0 %v1229_v29, %s2361_s29 }
 0x251   : > { %v1648_v2 = vsel %vm799_vm2, %v1616_v47, %v1535_v34  ;;  %v3388_v47 = vld [vmem:[#allocation2 + $0xb0] sm:$0xff] }
 0x252   : > { %v1569_v10 = vpop.permute.xlu0 %1568  ;;  %1854 = vrot.lane.b32.xlu2 %v1648_v2, %s2362_s30  ;;  %v1198_v2 = vsel %vm352_vm0, %v3388_v47, %v3001_v30  ;;  %v1615_v30 = vsel %vm352_vm0, %v1263_v33, %v3260_v28  ;;  %v1228_v28 = vsel %vm799_vm2, %v1196_v27, %v3113_v13 }
 0x253   : > { %v1665_v40 = vsel %vm799_vm2, %v1633_v43, %v1569_v10  ;;  %v1230_v23 = vsel %vm799_vm2, %v1198_v2, %v3158_v36  ;;  %v1561_v43 = vpop.permute.xlu2 %1560 }
 0x254   : > { %1888 = vrot.lane.b32.xlu1 %v1665_v40, %s2362_s30  ;;  %v1661_v10 = vsel %vm799_vm2, %v1629_v5, %v1561_v43  ;;  %v1331_v43 = vld [vmem:[#allocation2 + $0xfa] sm:$0xff]  ;;  %v1258_v5 = vld [vmem:[#allocation2 + $0x90] sm:$0xff] }
 0x258   : > { %1850 = vrot.lane.b32.xlu0 %v1646_v58, %s2362_s30  ;;  %v1565_v29 = vpop.permute.xlu1 %1564 }
 0x259   : > { %v1663_v34 = vsel %vm799_vm2, %v1631_v32, %v1565_v29  ;;  %v1261_v29 = vld [vmem:[#allocation2 + $0xb0] sm:$0xff] }
 0x25a   : > { %1756 = vrot.lane.b32.xlu2 %v1246_v1, %s2361_s29  ;;  %v1533_v4 = vpop.permute.xlu0 %1532  ;;  %v1213_v1 = vsel %vm352_vm0, %v3413_v6, %v3061_v57  ;;  %v1613_v57 = vsel %vm352_vm0, %v1261_v29, %v3247_v17  ;;  %v3443_v17 = vld [vmem:[#allocation2 + $0x150] sm:$0xff] }
 0x25b   : > { %v1647_v36 = vsel %vm799_vm2, %v1615_v30, %v1533_v4  ;;  %v1245_v52 = vsel %vm799_vm2, %v1213_v1, %v3205_v14  ;;  %v1194_v4 = vsel %vm352_vm0, %v3424_v59, %v3029_v50  ;;  %v1630_v14 = vsel %vm352_vm0, %v3312_v53, %v3310_v19  ;;  %v1525_v2 = vpop.permute.xlu2 %1524 }
 0x25c   : > { %1546 = vrot.lane.b32.xlu1 %v1334_v31, %s2360_s24  ;;  %v1226_v13 = vsel %vm799_vm2, %v1194_v4, %v3151_v9  ;;  %v1211_v19 = vsel %vm352_vm0, %v3443_v17, %v3100_v8  ;;  %v3495_v4 = vld [vmem:[#allocation2 + $0x138] sm:$0xff] }
 0x25d   : > { %v1243_v53 = vsel %vm799_vm2, %v1211_v19, %v3164_v16  ;;  %v3462_v16 = vld [vmem:[#allocation2 + $0x90] sm:$0xff]  ;;  %v4087_v19 = vld [vmem:[#allocation82_spill] sm:$0xff] }
 0x260   : > { %1752 = vrot.lane.b32.xlu0 %v1244_v37, %s2361_s29  ;;  %v1529_v58 = vpop.permute.xlu1 %1528 }
 0x261   : > { %v1645_v37 = vsel %vm799_vm2, %v1613_v57, %v1529_v58 }
 0x262   : > { %1884 = vrot.lane.b32.xlu2 %v1663_v34, %s2362_s30  ;;  %v1563_v40 = vpop.permute.xlu0 %1562  ;;  %v1275_v34 = vld [vmem:[#allocation2 + $0x158] sm:$0xff] }
 0x263   : > { %v1662_v50 = vsel %vm799_vm2, %v1630_v14, %v1563_v40  ;;  %v1627_v9 = vsel %vm352_vm0, %v1275_v34, %v3302_v18  ;;  %v1276_v18 = vld [vmem:[#allocation2 + $0x168] sm:$0xff] }
 0x264   : > { %1724 = vrot.lane.b32.xlu1 %v1230_v23, %s2361_s29  ;;  %v1628_v40 = vsel %vm352_vm0, %v1276_v18, %v3300_v63  ;;  %v1259_v63 = vld [vmem:[#allocation2 + $0x98] sm:$0xff]  ;;  %v3518_v34 = vld [vmem:[#allocation2 + $0x68] sm:$0xff]  ;;  %v4088_v18 = vld [vmem:[#allocation103_spill] sm:$0xff] }
 0x268   : > { %1880 = vrot.lane.b32.xlu0 %v1661_v10, %s2362_s30  ;;  %v1559_v32 = vpop.permute.xlu1 %1558  ;;  %v1610_v10 = vsel %vm352_vm0, %v1258_v5, %v3238_v48 }
 0x269   : > { %v1660_v30 = vsel %vm799_vm2, %v1628_v40, %v1559_v32  ;;  %v4089_v40 = vld [vmem:[#allocation9_spill] sm:$0xff] }
 0x26a   : > { %1542 = vrot.lane.b32.xlu2 %v1332_v22, %s2360_s24  ;;  %v1527_v31 = vpop.permute.xlu0 %1526  ;;  %v3456_v22 = vpop.permute.xlu2 %1554 }
 0x26c   : > { %1852 = vrot.lane.b32.xlu1 %v1647_v36, %s2362_s30  ;;  %v1195_v36 = vsel %vm352_vm0, %v3462_v16, %v2989_v26  ;;  %v1611_v26 = vsel %vm352_vm0, %v1259_v63, %v3211_v38 }
 0x26d   : > { %v1227_v48 = vsel %vm799_vm2, %v1195_v36, %v3149_v3  ;;  %v1643_v3 = vsel %vm799_vm2, %v1611_v26, %v1525_v2  ;;  %v1192_v2 = vsel %vm352_vm0, %v3518_v34, %v2977_v21  ;;  %v4090_v36 = vld [vmem:[#allocation97_spill] sm:$0xff] }
 0x270   : > { %1538 = vrot.lane.b32.xlu0 %v1330_v35, %s2360_s24  ;;  %v1523_v33 = vpop.permute.xlu1 %1522  ;;  %v3472_v35 = vld [vmem:[#allocation2 + $0x128] sm:$0xff] }
 0x271   : > { %v1642_v8 = vsel %vm799_vm2, %v1610_v10, %v1523_v33  ;;  %v1208_v27 = vsel %vm352_vm0, %v3472_v35, %v3091_v60  ;;  %v1274_v33 = vld [vmem:[#allocation2 + $0x150] sm:$0xff] }
 0x272   : > { %1720 = vrot.lane.b32.xlu2 %v1228_v28, %s2361_s29  ;;  %v1557_v23 = vpop.permute.xlu0 %1556  ;;  %v1240_v58 = vsel %vm799_vm2, %v1208_v27, %v3155_v42  ;;  %v1260_v28 = vld [vmem:[#allocation2 + $0xa8] sm:$0xff]  ;;  %v1551_v1 = vpop.permute.xlu2 %1550  ;;  %v3490_v42 = vld [vmem:[#allocation2 + $0x60] sm:$0xff]  ;;  %v4091_v27 = vld [vmem:[#allocation52_spill] sm:$0xff] }
 0x273   : > { %v1659_v12 = vsel %vm799_vm2, %v1627_v9, %v1557_v23  ;;  %v1612_v29 = vsel %vm352_vm0, %v1260_v28, %v3249_v15  ;;  %v1191_v38 = vsel %vm352_vm0, %v3490_v42, %v3017_v41  ;;  %v1209_v15 = vsel %vm352_vm0, %v3495_v4, %v3089_v39  ;;  %v1272_v39 = vld [vmem:[#allocation2 + $0x138] sm:$0xff]  ;;  %v4086_v9 = vld [vmem:[#allocation75_spill] sm:$0xff] }
 0x274   : > { %1754 = vrot.lane.b32.xlu1 %v1245_v52, %s2361_s29  ;;  %v1644_v60 = vsel %vm799_vm2, %v1612_v29, %v1527_v31  ;;  %v3503_v31 = vld [vmem:[#allocation2 + $0x140] sm:$0xff]  ;;  %v1241_v57 = vsel %vm799_vm2, %v1209_v15, %v3198_v11  ;;  %v1624_v32 = vsel %vm352_vm0, %v1272_v39, %v3294_v51  ;;  %v1224_v23 = vsel %vm799_vm2, %v1192_v2, %v3139_v7  ;;  %v4095_v39 = vld [vmem:[#allocation70_spill] sm:$0xff] }
 0x275   : > { %v1210_v41 = vsel %vm352_vm0, %v3503_v31, %v3049_v0  ;;  %v1656_v11 = vsel %vm799_vm2, %v1624_v32, %v1551_v1  ;;  %v1273_v7 = vld [vmem:[#allocation2 + $0x140] sm:$0xff]  ;;  %v3561_v1 = vld [vmem:[#allocation2 + $0x108] sm:$0xff] }
 0x276   : > { %v1625_v10 = vsel %vm352_vm0, %v1273_v7, %v4088_v18  ;;  %v4097_v2 = vld [vmem:[#allocation78_spill] sm:$0xff] }
 0x278   : > { %1716 = vrot.lane.b32.xlu0 %v1226_v13, %s2361_s29  ;;  %v1223_v13 = vsel %vm799_vm2, %v1191_v38, %v3142_v20  ;;  %v1242_v20 = vsel %vm799_vm2, %v1210_v41, %v3196_v54  ;;  %v3528_v54 = vld [vmem:[#allocation2 + $0x78] sm:$0xff]  ;;  %v1553_v5 = vpop.permute.xlu1 %1552 }
 0x27a   : > { %1848 = vrot.lane.b32.xlu2 %v1645_v37, %s2362_s30  ;;  %v3481_v52 = vpop.permute.xlu0 %1520  ;;  %v3510_v37 = vpop.permute.xlu2 %1548 }
 0x27c   : > { %1882 = vrot.lane.b32.xlu1 %v1662_v50, %s2362_s30  ;;  %v4085_v50 = vld [vmem:[#allocation23_spill] sm:$0xff] }
 0x27d   : > { %v782_v0 = vsel %vm352_vm0, %v3388_v47, %v4085_v50  ;;  %v1193_v47 = vsel %vm352_vm0, %v3528_v54, %v4086_v9  ;;  %v4096_v50 = vld [vmem:[#allocation86_spill] sm:$0xff]  ;;  %v4099_v9 = vld [vmem:[#allocation76_spill] sm:$0xff] }
 0x27e   : > { %v815_v51 = vsel %vm799_vm2, %v782_v0, %v2871_v45 }
 0x280   : > { %1876 = vrot.lane.b32.xlu0 %v1659_v12, %s2362_s30 }
 0x282   : > { %1750 = vrot.lane.b32.xlu2 %v1243_v53, %s2361_s29  ;;  %v1729_v14 = vpop.permute.xlu0 %1728  ;;  %v1225_v53 = vsel %vm799_vm2, %v1193_v47, %v4087_v19  ;;  %v1727_v45 = vpop.permute.xlu2 %1726 }
 0x283   : > { %v1938_v12 = vsel %vm1922_vm4, %v815_v51, %v1729_v14  ;;  %v4098_v51 = vld [vmem:[#allocation93_spill] sm:$0xff] }
 0x284   : > { %1540 = vrot.lane.b32.xlu1 %v1331_v43, %s2360_s24 }
 0x288   : > { %1842 = vrot.lane.b32.xlu0 %v1642_v8, %s2362_s30  ;;  %v1657_v8 = vsel %vm799_vm2, %v1625_v10, %v1553_v5  ;;  %v1761_v5 = vpop.permute.xlu1 %1760  ;;  %v4102_v10 = vld [vmem:[#allocation63_spill] sm:$0xff] }
 0x28a   : > { %1878 = vrot.lane.b32.xlu2 %v1660_v30, %s2362_s30  ;;  %v781_v30 = vsel %vm352_vm0, %v3349_v49, %v4089_v40  ;;  %v3611_v40 = vld [vmem:[#allocation2 + $0x50] sm:$0xff] }
 0x28c   : > { %1718 = vrot.lane.b32.xlu1 %v1227_v48, %s2361_s29  ;;  %v1626_v48 = vsel %vm352_vm0, %v1274_v33, %v4090_v36  ;;  %v3604_v33 = vld [vmem:[#allocation2 + $0x48] sm:$0xff] }
 0x28d   : > { %v1658_v28 = vsel %vm799_vm2, %v1626_v48, %v3456_v22  ;;  %v4094_v22 = vld [vmem:[#allocation95_spill] sm:$0xff]  ;;  %v4104_v48 = vld [vmem:[#allocation73_spill] sm:$0xff] }
 0x290   : > { %1744 = vrot.lane.b32.xlu0 %v1240_v58, %s2361_s29  ;;  %v814_v58 = vsel %vm799_vm2, %v781_v30, %v4091_v27  ;;  %v4103_v30 = vld [vmem:[#allocation85_spill] sm:$0xff]  ;;  %v1190_v27 = vsel %vm352_vm0, %v3611_v40, %v4104_v48 }
 0x292   : > { %1844 = vrot.lane.b32.xlu2 %v1643_v3, %s2362_s30  ;;  %v4092_v3 = vld [vmem:[#allocation79_spill] sm:$0xff] }
 0x293   : > { %v1205_v29 = vsel %vm352_vm0, %v3561_v1, %v4092_v3 }
 0x294   : > { %1846 = vrot.lane.b32.xlu1 %v1644_v60, %s2362_s30  ;;  %v4093_v60 = vld [vmem:[#allocation88_spill] sm:$0xff] }
 0x295   : > { %v1237_v38 = vsel %vm799_vm2, %v1205_v29, %v4093_v60  ;;  %v4107_v29 = vld [vmem:[#allocation69_spill] sm:$0xff] }
 0x298   : > { %1710 = vrot.lane.b32.xlu0 %v1223_v13, %s2361_s29  ;;  %v1257_v13 = vld [vmem:[#allocation2 + $0x80] sm:$0xff] }
 0x299   : > { %v1609_v15 = vsel %vm352_vm0, %v1257_v13, %v4094_v22  ;;  %v1271_v22 = vld [vmem:[#allocation2 + $0x128] sm:$0xff] }
 0x29a   : > { %1746 = vrot.lane.b32.xlu2 %v1241_v57, %s2361_s29  ;;  %v1641_v41 = vsel %vm799_vm2, %v1609_v15, %v3481_v52  ;;  %v3591_v52 = vld [vmem:[#allocation2 + $0x120] sm:$0xff] }
 0x29b   : > { %v1207_v47 = vsel %vm352_vm0, %v3591_v52, %v4099_v9  ;;  %v4111_v9 = vld [vmem:[#allocation25_spill] sm:$0xff] }
 0x29c   : > { %1748 = vrot.lane.b32.xlu1 %v1242_v20, %s2361_s29  ;;  %v3578_v20 = vld [vmem:[#allocation2 + $0x38] sm:$0xff] }
 0x29d   : > { %v1188_v32 = vsel %vm352_vm0, %v3578_v20, %v4095_v39 }
 0x29e   : > { %v1220_v0 = vsel %vm799_vm2, %v1188_v32, %v4096_v50  ;;  %v4110_v50 = vld [vmem:[#allocation96_spill] sm:$0xff] }
 0x2a0   : > { %1870 = vrot.lane.b32.xlu0 %v1656_v11, %s2362_s30  ;;  %v3583_v11 = vld [vmem:[#allocation2 + $0x110] sm:$0xff] }
 0x2a2   : > { %1712 = vrot.lane.b32.xlu2 %v1224_v23, %s2361_s29  ;;  %v1857_v21 = vpop.permute.xlu0 %1856 }
 0x2a3   : > { %v1971_v43 = vsel %vm1955_vm3, %v1938_v12, %v1857_v21  ;;  %v4100_v21 = vld [vmem:[#allocation92_spill] sm:$0xff] }
 0x2a4   : > { %1714 = vrot.lane.b32.xlu1 %v1225_v53, %s2361_s29  ;;  %2263 = vmatpush.xpose.msk.msra.mxu0 %vm1995_vm5, %v1971_v43  ;;  %v1239_v19 = vsel %vm799_vm2, %v1207_v47, %v4100_v21  ;;  %v1269_v53 = vld [vmem:[#allocation2 + $0x110] sm:$0xff]  ;;  %v796_v47 = vsel %vm352_vm0, %v3377_v25, %v4111_v9 }
 0x2a8   : > { %1836 = vrot.lane.b32.xlu0 %v3347_v62, %s2362_s30  ;;  %v1937_v62 = vsel %vm1922_vm4, %v814_v58, %v1727_v45  ;;  %v4101_v45 = vld [vmem:[#allocation101_spill] sm:$0xff] }
 0x2a9   : > { %v1621_v7 = vsel %vm352_vm0, %v1269_v53, %v4101_v45  ;;  %v4114_v45 = vld [vmem:[#allocation77_spill] sm:$0xff] }
 0x2aa   : > { %1872 = vrot.lane.b32.xlu2 %v1657_v8, %s2362_s30  ;;  %v1759_v63 = vpop.permute.xlu0 %1758  ;;  %v1189_v8 = vsel %vm352_vm0, %v3604_v33, %v4102_v10 }
 0x2ab   : > { %v1221_v36 = vsel %vm799_vm2, %v1189_v8, %v4103_v30  ;;  %v3673_v30 = vld [vmem:[#allocation2 + $0x18] sm:$0xff] }
 0x2ac   : > { %1874 = vrot.lane.b32.xlu1 %v1658_v28, %s2362_s30  ;;  %v1855_v26 = vpop.permute.xlu2 %1854  ;;  %v4105_v28 = vld [vmem:[#allocation81_spill] sm:$0xff] }
 0x2ad   : > { %v1970_v49 = vsel %vm1955_vm3, %v1937_v62, %v1855_v26  ;;  %v1222_v62 = vsel %vm799_vm2, %v1190_v27, %v4105_v28  ;;  %v4106_v26 = vld [vmem:[#allocation38_spill] sm:$0xff]  ;;  %v4117_v27 = vld [vmem:[#allocation68_spill] sm:$0xff] }
 0x2ae   : > { %2264 = vmatpush.xpose.msk.msra.mxu0 %vm1995_vm5, %v1970_v49  ;;  %v798_v49 = vsel %vm352_vm0, %v3366_v56, %v4106_v26  ;;  %v4109_v56 = vld [vmem:[#allocation57_spill] sm:$0xff]  ;;  %v4118_v28 = vld [vmem:[#allocation84_spill] sm:$0xff] }
 0x2af   : > { %v831_v60 = vsel %vm799_vm2, %v798_v49, %v4107_v29  ;;  %v3682_v26 = vld [vmem:[#allocation2 + $0xf8] sm:$0xff]  ;;  %v4119_v49 = vld [vmem:[#allocation74_spill] sm:$0xff] }
 0x2b0   : > { %1738 = vrot.lane.b32.xlu0 %v1237_v38, %s2361_s29  ;;  %v1954_v38 = vsel %vm1922_vm4, %v831_v60, %v1761_v5  ;;  %v1204_v29 = vsel %vm352_vm0, %v3682_v26, %v4119_v49 }
 0x2b2   : > { %1838 = vrot.lane.b32.xlu2 %v3342_v44, %s2362_s30  ;;  %v1887_v57 = vpop.permute.xlu0 %1886  ;;  %v1206_v44 = vsel %vm352_vm0, %v3583_v11, %v4097_v2 }
 0x2b3   : > { %v1238_v23 = vsel %vm799_vm2, %v1206_v44, %v4098_v51  ;;  %v1270_v51 = vld [vmem:[#allocation2 + $0x120] sm:$0xff] }
 0x2b4   : > { %1840 = vrot.lane.b32.xlu1 %v1641_v41, %s2362_s30  ;;  %v1757_v14 = vpop.permute.xlu2 %1756  ;;  %v4108_v41 = vld [vmem:[#allocation39_spill] sm:$0xff] }
 0x2b5   : > { %v797_v39 = vsel %vm352_vm0, %v3413_v6, %v4108_v41  ;;  %v3694_v41 = vld [vmem:[#allocation2 + $0xf0] sm:$0xff] }
 0x2b6   : > { %v830_v32 = vsel %vm799_vm2, %v797_v39, %v4109_v56  ;;  %v4123_v56 = vld [vmem:[#allocation24_spill] sm:$0xff] }
 0x2b7   : > { %v1953_v2 = vsel %vm1922_vm4, %v830_v32, %v1759_v63  ;;  %v3654_v63 = vld [vmem:[#allocation2 + $0xe0] sm:$0xff]  ;;  %v1203_v32 = vsel %vm352_vm0, %v3694_v41, %v4123_v56  ;;  %v4135_v56 = vld [vmem:[#allocation35_spill] sm:$0xff] }
 0x2b8   : > { %1704 = vrot.lane.b32.xlu0 %v1220_v0, %s2361_s29  ;;  %v1623_v0 = vsel %vm352_vm0, %v1271_v22, %v4110_v50  ;;  %v1986_v6 = vsel %vm1955_vm3, %v1953_v2, %v1887_v57  ;;  %v1202_v25 = vsel %vm352_vm0, %v3654_v63, %v4114_v45  ;;  %v4121_v22 = vld [vmem:[#allocation19_spill] sm:$0xff] }
 0x2b9   : > { %v4124_v2 = vld [vmem:[#allocation91_spill] sm:$0xff] }
 0x2ba   : > { %1740 = vrot.lane.b32.xlu2 %v1238_v23, %s2361_s29  ;;  %v1545_v12 = vpop.permute.xlu0 %1544  ;;  %v1655_v23 = vsel %vm799_vm2, %v1623_v0, %v3510_v37 }
 0x2bb   : > { %v1653_v18 = vsel %vm799_vm2, %v1621_v7, %v1545_v12  ;;  %v4112_v12 = vld [vmem:[#allocation66_spill] sm:$0xff] }
 0x2bc   : > { %1742 = vrot.lane.b32.xlu1 %v1239_v19, %s2361_s29  ;;  %v1885_v43 = vpop.permute.xlu2 %1884  ;;  %v829_v21 = vsel %vm799_vm2, %v796_v47, %v4112_v12  ;;  %v4113_v19 = vld [vmem:[#allocation100_spill] sm:$0xff]  ;;  %v3710_v12 = vld [vmem:[#allocation2 + $0x30] sm:$0xff] }
 0x2bd   : > { %v1622_v53 = vsel %vm352_vm0, %v1270_v51, %v4113_v19  ;;  %v1952_v37 = vsel %vm1922_vm4, %v829_v21, %v1757_v14  ;;  %v4116_v14 = vld [vmem:[#allocation104_spill] sm:$0xff]  ;;  %v1235_v51 = vsel %vm799_vm2, %v1203_v32, %v4124_v2  ;;  %v4136_v32 = vld [vmem:[#allocation67_spill] sm:$0xff] }
 0x2be   : > { %v1985_v5 = vsel %vm1955_vm3, %v1952_v37, %v1885_v43  ;;  %v1185_v43 = vsel %vm352_vm0, %v3673_v30, %v4117_v27  ;;  %v4126_v21 = vld [vmem:[#allocation40_spill] sm:$0xff]  ;;  %v3730_v27 = vld [vmem:[#allocation2 + $0x20] sm:$0xff] }
 0x2c0   : > { %1864 = vrot.lane.b32.xlu0 %v1653_v18, %s2362_s30  ;;  %v4115_v18 = vld [vmem:[#allocation87_spill] sm:$0xff] }
 0x2c1   : > { %v1234_v10 = vsel %vm799_vm2, %v1202_v25, %v4115_v18 }
 0x2c2   : > { %1706 = vrot.lane.b32.xlu2 %v1221_v36, %s2361_s29  ;;  %v3619_v58 = vpop.permute.xlu0 %1722 }
 0x2c4   : > { %1708 = vrot.lane.b32.xlu1 %v1222_v62, %s2361_s29  ;;  %v3627_v3 = vpop.permute.xlu2 %1542  ;;  %v1217_v62 = vsel %vm799_vm2, %v1185_v43, %v4118_v28  ;;  %v4131_v43 = vld [vmem:[#allocation49_spill] sm:$0xff]  ;;  %v4132_v28 = vld [vmem:[#allocation60_spill] sm:$0xff] }
 0x2c6   : > { %v1889_v13 = vpop.permute.xlu1 %1888 }
 0x2c7   : > { %v1987_v15 = vsel %vm1955_vm3, %v1954_v38, %v1889_v13  ;;  %v4120_v38 = vld [vmem:[#allocation90_spill] sm:$0xff] }
 0x2c8   : > { %2280 = vmatpush.xpose.msk.msra.mxu1 %vm1995_vm5, %v1987_v15  ;;  %1830 = vrot.lane.b32.xlu0 %v3336_v61, %s2362_s30  ;;  %v1236_v13 = vsel %vm799_vm2, %v1204_v29, %v4120_v38  ;;  %v780_v15 = vsel %vm352_vm0, %v3407_v46, %v4121_v22  ;;  %v4133_v29 = vld [vmem:[#allocation83_spill] sm:$0xff]  ;;  %v1268_v38 = vld [vmem:[#allocation2 + $0x108] sm:$0xff] }
 0x2c9   : > { %v4134_v22 = vld [vmem:[#allocation94_spill] sm:$0xff] }
 0x2ca   : > { %v1851_v44 = vpop.permute.xlu0 %1850 }
 0x2cc   : > { %1868 = vrot.lane.b32.xlu1 %v1655_v23, %s2362_s30  ;;  %2281 = vmatpush.xpose.msk.msra.mxu1 %vm1995_vm5, %v1986_v6  ;;  %v1721_v61 = vpop.permute.xlu2 %1720  ;;  %v1266_v23 = vld [vmem:[#allocation2 + $0xf0] sm:$0xff]  ;;  %v4125_v6 = vld [vmem:[#allocation20_spill] sm:$0xff] }
 0x2cd   : > { %v779_v9 = vsel %vm352_vm0, %v3462_v16, %v4125_v6 }
 0x2ce   : > { %v1547_v57 = vpop.permute.xlu1 %1546  ;;  %v812_v19 = vsel %vm799_vm2, %v779_v9, %v4126_v21  ;;  %v1267_v9 = vld [vmem:[#allocation2 + $0xf8] sm:$0xff] }
 0x2cf   : > { %v1654_v7 = vsel %vm799_vm2, %v1622_v53, %v1547_v57  ;;  %v4127_v53 = vld [vmem:[#allocation71_spill] sm:$0xff]  ;;  %v1935_v16 = vsel %vm1922_vm4, %v812_v19, %v3619_v58  ;;  %v4139_v19 = vld [vmem:[#allocation21_spill] sm:$0xff] }
 0x2d0   : > { %1866 = vrot.lane.b32.xlu2 %v1654_v7, %s2362_s30  ;;  %2282 = vmatpush.xpose.msk.msra.mxu1 %vm1995_vm5, %v1985_v5  ;;  %v1187_v37 = vsel %vm352_vm0, %v3710_v12, %v4127_v53  ;;  %v4128_v57 = vld [vmem:[#allocation99_spill] sm:$0xff]  ;;  %v4129_v7 = vld [vmem:[#allocation80_spill] sm:$0xff]  ;;  %v1968_v18 = vsel %vm1955_vm3, %v1935_v16, %v1851_v44  ;;  %v1186_v44 = vsel %vm352_vm0, %v3730_v27, %v4132_v28  ;;  %v4142_v16 = vld [vmem:[#allocation98_spill] sm:$0xff] }
 0x2d1   : > { %1732 = vrot.lane.b32.xlu0 %v1234_v10, %s2361_s29  ;;  %v1618_v45 = vsel %vm352_vm0, %v1266_v23, %v4128_v57  ;;  %v1219_v5 = vsel %vm799_vm2, %v1187_v37, %v4129_v7  ;;  %v4137_v23 = vld [vmem:[#allocation36_spill] sm:$0xff]  ;;  %v793_v53 = vsel %vm352_vm0, %v3495_v4, %v4139_v19  ;;  %v4140_v57 = vld [vmem:[#allocation102_spill] sm:$0xff] }
 0x2d2   : > { %v3669_v8 = vpop.permute.xlu0 %1752  ;;  %v3780_v4 = vld [vmem:[#allocation2 + $0xd8] sm:$0xff] }
 0x2d4   : > { %1834 = vrot.lane.b32.xlu1 %v4116_v14, %s2362_s30  ;;  %v1849_v36 = vpop.permute.xlu2 %1848  ;;  %v4130_v14 = vld [vmem:[#allocation6_spill] sm:$0xff] }
 0x2d6   : > { %v1725_v48 = vpop.permute.xlu1 %1724 }
 0x2d8   : > { %1832 = vrot.lane.b32.xlu2 %v3331_v24, %s2362_s30  ;;  %v4122_v24 = vld [vmem:[#allocation53_spill] sm:$0xff] }
 0x2d9   : > { %1698 = vrot.lane.b32.xlu0 %v1217_v62, %s2361_s29  ;;  %v813_v39 = vsel %vm799_vm2, %v780_v15, %v4122_v24  ;;  %v1620_v15 = vsel %vm352_vm0, %v1268_v38, %v4134_v22 }
 0x2da   : > { %v1881_v60 = vpop.permute.xlu0 %1880  ;;  %v1936_v50 = vsel %vm1922_vm4, %v813_v39, %v1725_v48  ;;  %v778_v48 = vsel %vm352_vm0, %v3424_v59, %v4130_v14  ;;  %v1218_v59 = vsel %vm799_vm2, %v1186_v44, %v4133_v29  ;;  %v1652_v39 = vsel %vm799_vm2, %v1620_v15, %v3627_v3  ;;  %v4138_v3 = vld [vmem:[#allocation54_spill] sm:$0xff]  ;;  %v4145_v44 = vld [vmem:[#allocation16_spill] sm:$0xff]  ;;  %v4148_v15 = vld [vmem:[#allocation37_spill] sm:$0xff] }
 0x2db   : > { %v811_v58 = vsel %vm799_vm2, %v778_v48, %v4131_v43  ;;  %v4144_v48 = vld [vmem:[#allocation89_spill] sm:$0xff] }
 0x2dc   : > { %1736 = vrot.lane.b32.xlu1 %v1236_v13, %s2361_s29  ;;  %v1751_v47 = vpop.permute.xlu2 %1750  ;;  %v1934_v62 = vsel %vm1922_vm4, %v811_v58, %v1721_v61  ;;  %v795_v61 = vsel %vm352_vm0, %v3443_v17, %v4135_v56 }
 0x2dd   : > { %v1967_v13 = vsel %vm1955_vm3, %v1934_v62, %v1849_v36  ;;  %v828_v36 = vsel %vm799_vm2, %v795_v61, %v4136_v32  ;;  %v777_v62 = vsel %vm352_vm0, %v3528_v54, %v4145_v44  ;;  %v4149_v61 = vld [vmem:[#allocation32_spill] sm:$0xff] }
 0x2de   : > { %v1853_v0 = vpop.permute.xlu1 %1852 }
 0x2df   : > { %v1969_v46 = vsel %vm1955_vm3, %v1936_v50, %v1853_v0 }
 0x2e0   : > { %1734 = vrot.lane.b32.xlu2 %v1235_v51, %s2361_s29  ;;  %2265 = vmatpush.xpose.msk.msra.mxu0 %vm1995_vm5, %v1969_v46  ;;  %v794_v46 = vsel %vm352_vm0, %v3503_v31, %v4137_v23  ;;  %v4141_v31 = vld [vmem:[#allocation64_spill] sm:$0xff] }
 0x2e1   : > { %v827_v17 = vsel %vm799_vm2, %v794_v46, %v4138_v3  ;;  %v4151_v46 = vld [vmem:[#allocation5_spill] sm:$0xff] }
 0x2e2   : > { %v1539_v25 = vpop.permute.xlu0 %1538  ;;  %v1950_v6 = vsel %vm1922_vm4, %v827_v17, %v3669_v8  ;;  %v775_v3 = vsel %vm352_vm0, %v3490_v42, %v4151_v46  ;;  %v4152_v17 = vld [vmem:[#allocation46_spill] sm:$0xff] }
 0x2e3   : > { %v1650_v10 = vsel %vm799_vm2, %v1618_v45, %v1539_v25  ;;  %v1983_v21 = vsel %vm1955_vm3, %v1950_v6, %v1881_v60  ;;  %v826_v45 = vsel %vm799_vm2, %v793_v53, %v4141_v31  ;;  %v1619_v25 = vsel %vm352_vm0, %v1267_v9, %v4142_v16  ;;  %v4153_v53 = vld [vmem:[#allocation33_spill] sm:$0xff]  ;;  %v4154_v31 = vld [vmem:[#allocation51_spill] sm:$0xff]  ;;  %v4155_v42 = vld [vmem:[#allocation18_spill] sm:$0xff] }
 0x2e4   : > { %1702 = vrot.lane.b32.xlu1 %v1219_v5, %s2361_s29  ;;  %2266 = vmatpush.xpose.msk.msra.mxu0 %vm1995_vm5, %v1968_v18  ;;  %v1879_v24 = vpop.permute.xlu2 %1878  ;;  %v1949_v8 = vsel %vm1922_vm4, %v826_v45, %v1751_v47  ;;  %v808_v6 = vsel %vm799_vm2, %v775_v3, %v4152_v17  ;;  %v790_v16 = vsel %vm352_vm0, %v3583_v11, %v4155_v42  ;;  %v4158_v11 = vld [vmem:[#allocation47_spill] sm:$0xff]  ;;  %v4166_v3 = vld [vmem:[#allocation48_spill] sm:$0xff] }
 0x2e5   : > { %1858 = vrot.lane.b32.xlu0 %v1650_v10, %s2362_s30  ;;  %v1982_v5 = vsel %vm1955_vm3, %v1949_v8, %v1879_v24  ;;  %v4143_v10 = vld [vmem:[#allocation72_spill] sm:$0xff] }
 0x2e6   : > { %v1755_v49 = vpop.permute.xlu1 %1754  ;;  %v1201_v14 = vsel %vm352_vm0, %v3780_v4, %v4143_v10 }
 0x2e7   : > { %v1951_v50 = vsel %vm1922_vm4, %v828_v36, %v1755_v49  ;;  %v1233_v43 = vsel %vm799_vm2, %v1201_v14, %v4144_v48  ;;  %v4146_v49 = vld [vmem:[#allocation50_spill] sm:$0xff]  ;;  %v4150_v36 = vld [vmem:[#allocation65_spill] sm:$0xff] }
 0x2e8   : > { %1700 = vrot.lane.b32.xlu2 %v1218_v59, %s2361_s29  ;;  %2267 = vmatpush.xpose.msk.msra.mxu0 %vm1995_vm5, %v1967_v13  ;;  %v810_v29 = vsel %vm799_vm2, %v777_v62, %v4146_v49  ;;  %v4147_v59 = vld [vmem:[#allocation17_spill] sm:$0xff]  ;;  %v4160_v49 = vld [vmem:[#allocation34_spill] sm:$0xff] }
 0x2e9   : > { %v776_v38 = vsel %vm352_vm0, %v3518_v34, %v4147_v59  ;;  %v792_v34 = vsel %vm352_vm0, %v3472_v35, %v4149_v61  ;;  %v4157_v14 = vld [vmem:[#allocation13_spill] sm:$0xff]  ;;  %v4163_v61 = vld [vmem:[#allocation4_spill] sm:$0xff] }
 0x2ea   : > { %v1717_v2 = vpop.permute.xlu0 %1716  ;;  %v809_v24 = vsel %vm799_vm2, %v776_v38, %v4148_v15  ;;  %v774_v48 = vsel %vm352_vm0, %v3611_v40, %v4157_v14  ;;  %v4162_v15 = vld [vmem:[#allocation62_spill] sm:$0xff] }
 0x2ec   : > { %1862 = vrot.lane.b32.xlu1 %v1652_v39, %s2362_s30  ;;  %v1845_v37 = vpop.permute.xlu2 %1844  ;;  %v1932_v39 = vsel %vm1922_vm4, %v809_v24, %v1717_v2 }
 0x2ed   : > { %v1965_v54 = vsel %vm1955_vm3, %v1932_v39, %v1845_v37  ;;  %v791_v37 = vsel %vm352_vm0, %v3591_v52, %v4153_v53  ;;  %v4168_v53 = vld [vmem:[#allocation58_spill] sm:$0xff] }
 0x2ee   : > { %v1883_v0 = vpop.permute.xlu1 %1882  ;;  %v824_v45 = vsel %vm799_vm2, %v791_v37, %v4154_v31 }
 0x2ef   : > { %v1984_v51 = vsel %vm1955_vm3, %v1951_v50, %v1883_v0  ;;  %v825_v50 = vsel %vm799_vm2, %v792_v34, %v4150_v36  ;;  %v772_v34 = vsel %vm352_vm0, %v3578_v20, %v4163_v61  ;;  %v4164_v36 = vld [vmem:[#allocation43_spill] sm:$0xff] }
 0x2f0   : > { %2283 = vmatpush.xpose.msk.msra.mxu1 %vm1995_vm5, %v1984_v51 }
 0x2f2   : > { %v1877_v18 = vpop.permute.xlu0 %1876 }
 0x2f4   : > { %1828 = vrot.lane.b32.xlu1 %v4140_v57, %s2362_s30  ;;  %2284 = vmatpush.xpose.msk.msra.mxu1 %vm1995_vm5, %v1983_v21  ;;  %v1747_v47 = vpop.permute.xlu2 %1746 }
 0x2f6   : > { %v1541_v7 = vpop.permute.xlu1 %1540 }
 0x2f7   : > { %v1651_v60 = vsel %vm799_vm2, %v1619_v25, %v1541_v7  ;;  %v1947_v25 = vsel %vm1922_vm4, %v824_v45, %v1747_v47  ;;  %v4156_v7 = vld [vmem:[#allocation61_spill] sm:$0xff]  ;;  %v4159_v47 = vld [vmem:[#allocation14_spill] sm:$0xff]  ;;  %v4169_v45 = vld [vmem:[#allocation3_spill] sm:$0xff] }
 0x2f8   : > { %1860 = vrot.lane.b32.xlu2 %v1651_v60, %s2362_s30  ;;  %2285 = vmatpush.xpose.msk.msra.mxu1 %vm1995_vm5, %v1982_v5  ;;  %v823_v60 = vsel %vm799_vm2, %v790_v16, %v4156_v7  ;;  %v771_v42 = vsel %vm352_vm0, %v3710_v12, %v4169_v45  ;;  %v4170_v16 = vld [vmem:[#allocation44_spill] sm:$0xff] }
 0x2fa   : > { %v1843_v28 = vpop.permute.xlu0 %1842 }
 0x2fc   : > { %1730 = vrot.lane.b32.xlu1 %v1233_v43, %s2361_s29  ;;  %v1713_v56 = vpop.permute.xlu2 %1712  ;;  %v807_v43 = vsel %vm799_vm2, %v774_v48, %v4158_v11  ;;  %v4173_v11 = vld [vmem:[#allocation26_spill] sm:$0xff] }
 0x2fe   : > { %v1719_v58 = vpop.permute.xlu1 %1718 }
 0x2ff   : > { %v1933_v13 = vsel %vm1922_vm4, %v810_v29, %v1719_v58  ;;  %v773_v58 = vsel %vm352_vm0, %v3604_v33, %v4159_v47  ;;  %v4174_v47 = vld [vmem:[#allocation59_spill] sm:$0xff] }
 0x300   : > { %1826 = vrot.lane.b32.xlu2 %v3323_v55, %s2362_s30  ;;  %v806_v29 = vsel %vm799_vm2, %v773_v58, %v4160_v49  ;;  %v1989_v49 = vld [vmem:[%s3978_s3] sm:$0xff] }
 0x302   : > { %v1745_v32 = vpop.permute.xlu0 %1744 }
 0x304   : > { %v1873_v23 = vpop.permute.xlu2 %1872 }
 0x306   : > { %v1847_v22 = vpop.permute.xlu1 %1846 }
 0x307   : > { %v1966_v55 = vsel %vm1955_vm3, %v1933_v13, %v1847_v22  ;;  %v4161_v22 = vld [vmem:[#allocation29_spill] sm:$0xff] }
 0x308   : > { %2268 = vmatpush.xpose.msk.msra.mxu0 %vm1995_vm5, %v1966_v55  ;;  %v789_v33 = vsel %vm352_vm0, %v3561_v1, %v4161_v22 }
 0x309   : > { %v822_v24 = vsel %vm799_vm2, %v789_v33, %v4162_v15 }
 0x30a   : > { %v1711_v9 = vpop.permute.xlu0 %1710 }
 0x30b   : > { %v1929_v40 = vsel %vm1922_vm4, %v806_v29, %v1711_v9  ;;  %v4175_v29 = vld [vmem:[#allocation7_spill] sm:$0xff] }
 0x30c   : > { %2269 = vmatpush.xpose.msk.msra.mxu0 %vm1995_vm5, %v1965_v54  ;;  %v1839_v57 = vpop.permute.xlu2 %1838 }
 0x30d   : > { %v1962_v13 = vsel %vm1955_vm3, %v1929_v40, %v1839_v57  ;;  %v4176_v40 = vld [vmem:[#allocation41_spill] sm:$0xff] }
 0x30e   : > { %v1749_v0 = vpop.permute.xlu1 %1748 }
 0x30f   : > { %v1948_v51 = vsel %vm1922_vm4, %v825_v50, %v1749_v0  ;;  %v805_v50 = vsel %vm799_vm2, %v772_v34, %v4164_v36  ;;  %v2333_v36 = vld [vmem:[#allocation2 + $0xc8] sm:$0xff] }
 0x310   : > { %v1981_v2 = vsel %vm1955_vm3, %v1948_v51, %v1877_v18  ;;  %v1946_v18 = vsel %vm1922_vm4, %v823_v60, %v1745_v32  ;;  %v4171_v60 = vld [vmem:[#allocation10_spill] sm:$0xff] }
 0x311   : > { %2286 = vmatpush.xpose.msk.msra.mxu1 %vm1995_vm5, %v1981_v2  ;;  %v1979_v10 = vsel %vm1955_vm3, %v1946_v18, %v1873_v23  ;;  %v4165_v23 = vld [vmem:[#allocation30_spill] sm:$0xff]  ;;  %v4172_v18 = vld [vmem:[#allocation31_spill] sm:$0xff] }
 0x312   : > { %v1871_v52 = vpop.permute.xlu0 %1870  ;;  %v788_v46 = vsel %vm352_vm0, %v3682_v26, %v4165_v23 }
 0x313   : > { %v821_v17 = vsel %vm799_vm2, %v788_v46, %v4166_v3  ;;  %v4181_v46 = vld [vmem:[#allocation11_spill] sm:$0xff] }
 0x314   : > { %v1741_v44 = vpop.permute.xlu2 %1740 }
 0x315   : > { %v1944_v20 = vsel %vm1922_vm4, %v821_v17, %v1741_v44  ;;  %v415_v17 = vld [vmem:[#allocation2] sm:$0xff] }
 0x316   : > { %v1715_v35 = vpop.permute.xlu1 %1714 }
 0x317   : > { %v1931_v21 = vsel %vm1922_vm4, %v808_v6, %v1715_v35 }
 0x318   : > { %v1964_v19 = vsel %vm1955_vm3, %v1931_v21, %v1843_v28  ;;  %v1930_v28 = vsel %vm1922_vm4, %v807_v43, %v1713_v56  ;;  %v4167_v21 = vld [vmem:[#allocation15_spill] sm:$0xff]  ;;  %v786_v43 = vsel %vm352_vm0, %v3654_v63, %v4173_v11  ;;  %v2363_v63 = vmov 0  }
 0x319   : > { %2270 = vmatpush.xpose.msk.msra.mxu0 %vm1995_vm5, %v1964_v19  ;;  %v787_v19 = vsel %vm352_vm0, %v3694_v41, %v4167_v21  ;;  %2331 = vset.pattern.permute.xlu1 %v2363_v63 }
 0x31a   : > { %v1837_v38 = vpop.permute.xlu0 %1836  ;;  %v820_v37 = vsel %vm799_vm2, %v787_v19, %v4168_v53  ;;  %2332 = vset.pattern.permute.xlu0 %v2363_v63  ;;  %1992 = vperm.xlu1 %2331, %v1989_v49   ;;  %v4183_v53 = vld [vmem:[#allocation8_spill] sm:$0xff] }
 0x31c   : > { %v1707_v56 = vpop.permute.xlu2 %1706 }
 0x31e   : > { %v1875_v8 = vpop.permute.xlu1 %1874 }
 0x31f   : > { %v1980_v5 = vsel %vm1955_vm3, %v1947_v25, %v1875_v8  ;;  %v804_v25 = vsel %vm799_vm2, %v771_v42, %v4170_v16  ;;  %v1988_v16 = vld [vmem:[%s3977_s2] sm:$0xff] }
 0x320   : > { %2287 = vmatpush.xpose.msk.msra.mxu1 %vm1995_vm5, %v1980_v5  ;;  %v1927_v41 = vsel %vm1922_vm4, %v804_v25, %v1707_v56  ;;  %v770_v5 = vsel %vm352_vm0, %v3730_v27, %v4171_v60  ;;  %v819_v27 = vsel %vm799_vm2, %v786_v43, %v4174_v47  ;;  %v2334_v25 = vld [vmem:[#allocation2 + $0xc0] sm:$0xff] }
 0x322   : > { %v1739_v32 = vpop.permute.xlu0 %1738 }
 0x323   : > { %v1943_v26 = vsel %vm1922_vm4, %v820_v37, %v1739_v32  ;;  %v767_v37 = vsel %vm352_vm0, %v415_v17, %v4183_v53 }
 0x324   : > { %2288 = vmatpush.xpose.msk.msra.mxu1 %vm1995_vm5, %v1979_v10 }
 0x326   : > { %v1841_v62 = vpop.permute.xlu1 %1840 }
 0x327   : > { %v1963_v59 = vsel %vm1955_vm3, %v1930_v28, %v1841_v62 }
 0x328   : > { %2271 = vmatpush.xpose.msk.msra.mxu0 %vm1995_vm5, %v1963_v59  ;;  %v769_v59 = vsel %vm352_vm0, %v3673_v30, %v4175_v29  ;;  %v4178_v30 = vld [vmem:[#allocation45_spill] sm:$0xff] }
 0x32a   : > { %v1867_v51 = vpop.permute.xlu2 %1866  ;;  %v1705_v35 = vpop.permute.xlu0 %1704 }
 0x32b   : > { %v1976_v31 = vsel %vm1955_vm3, %v1943_v26, %v1867_v51  ;;  %v4180_v51 = vld [vmem:[#allocation55_spill] sm:$0xff] }
 0x32c   : > { %2272 = vmatpush.xpose.msk.msra.mxu0 %vm1995_vm5, %v1962_v13 }
 0x32e   : > { %v1743_v55 = vpop.permute.xlu1 %1742 }
 0x32f   : > { %v1945_v39 = vsel %vm1922_vm4, %v822_v24, %v1743_v55  ;;  %v4177_v24 = vld [vmem:[#allocation27_spill] sm:$0xff] }
 0x330   : > { %v1978_v54 = vsel %vm1955_vm3, %v1945_v39, %v1871_v52  ;;  %v803_v52 = vsel %vm799_vm2, %v770_v5, %v4172_v18  ;;  %v785_v55 = vsel %vm352_vm0, %v3780_v4, %v4177_v24 }
 0x331   : > { %2289 = vmatpush.xpose.msk.msra.mxu1 %vm1995_vm5, %v1978_v54  ;;  %v1926_v10 = vsel %vm1922_vm4, %v803_v52, %v1705_v35  ;;  %v818_v39 = vsel %vm799_vm2, %v785_v55, %v4178_v30 }
 0x332   : > { %v1833_v57 = vpop.permute.xlu2 %1832  ;;  %v1865_v12 = vpop.permute.xlu0 %1864 }
 0x333   : > { %v1959_v14 = vsel %vm1955_vm3, %v1926_v10, %v1833_v57  ;;  %v4184_v57 = vld [vmem:[#allocation28_spill] sm:$0xff] }
 0x336   : > { %v1709_v1 = vpop.permute.xlu1 %1708 }
 0x337   : > { %v1928_v0 = vsel %vm1922_vm4, %v805_v50, %v1709_v1  ;;  %v4179_v50 = vld [vmem:[#allocation12_spill] sm:$0xff] }
 0x338   : > { %v1961_v2 = vsel %vm1955_vm3, %v1928_v0, %v1837_v38  ;;  %v802_v38 = vsel %vm799_vm2, %v769_v59, %v4176_v40  ;;  %v784_v1 = vsel %vm352_vm0, %v2333_v36, %v4179_v50  ;;  %v416_v0 = vld [vmem:[#allocation2 + $0x8] sm:$0xff] }
 0x339   : > { %2273 = vmatpush.xpose.msk.msra.mxu0 %vm1995_vm5, %v1961_v2  ;;  %v817_v4 = vsel %vm799_vm2, %v784_v1, %v4180_v51  ;;  %v768_v3 = vsel %vm352_vm0, %v416_v0, %v4181_v46 }
 0x33a   : > { %v1735_v48 = vpop.permute.xlu2 %1734  ;;  %v1831_v62 = vpop.permute.xlu0 %1830 }
 0x33b   : > { %v1941_v54 = vsel %vm1922_vm4, %v818_v39, %v1735_v48 }
 0x33e   : > { %v1869_v6 = vpop.permute.xlu1 %1868 }
 0x33f   : > { %v1977_v9 = vsel %vm1955_vm3, %v1944_v20, %v1869_v6  ;;  %v4182_v20 = vld [vmem:[#allocation42_spill] sm:$0xff] }
 0x340   : > { %2290 = vmatpush.xpose.msk.msra.mxu1 %vm1995_vm5, %v1977_v9  ;;  %v801_v6 = vsel %vm799_vm2, %v768_v3, %v4182_v20 }
 0x342   : > { %v1701_v13 = vpop.permute.xlu2 %1700 }
 0x343   : > { %v1733_v56 = vpop.permute.xlu0 %1732  ;;  %v1924_v35 = vsel %vm1922_vm4, %v801_v6, %v1701_v13 }
 0x344   : > { %2291 = vmatpush.xpose.msk.msra.mxu1 %vm1995_vm5, %v1976_v31  ;;  %v1940_v2 = vsel %vm1922_vm4, %v817_v4, %v1733_v56  ;;  %v800_v31 = vsel %vm799_vm2, %v767_v37, %v4184_v57 }
 0x346   : > { %v1835_v8 = vpop.permute.xlu1 %1834 }
 0x347   : > { %v1960_v7 = vsel %vm1955_vm3, %v1927_v41, %v1835_v8  ;;  %v4185_v41 = vld [vmem:[#allocation22_spill] sm:$0xff] }
 0x348   : > { %2274 = vmatpush.xpose.msk.msra.mxu0 %vm1995_vm5, %v1960_v7  ;;  %v783_v8 = vsel %vm352_vm0, %v2334_v25, %v4185_v41  ;;  %v4186_v7 = vld [vmem:[#allocation56_spill] sm:$0xff] }
 0x349   : > { %v816_v60 = vsel %vm799_vm2, %v783_v8, %v4186_v7 }
 0x34b   : > { %v1699_v21 = vpop.permute.xlu0 %1698 }
 0x34c   : > { %2275 = vmatpush.xpose.msk.msra.mxu0 %vm1995_vm5, %v1959_v14  ;;  %v1923_v45 = vsel %vm1922_vm4, %v800_v31, %v1699_v21 }
 0x34e   : > { %v1737_v58 = vpop.permute.xlu1 %1736 }
 0x34f   : > { %v1942_v28 = vsel %vm1922_vm4, %v819_v27, %v1737_v58 }
 0x350   : > { %v1975_v44 = vsel %vm1955_vm3, %v1942_v28, %v1865_v12 }
 0x351   : > { %2292 = vmatpush.xpose.msk.msra.mxu1 %vm1995_vm5, %v1975_v44 }
 0x352   : > { %v1861_v61 = vpop.permute.xlu2 %1860 }
 0x353   : > { %v1973_v23 = vsel %vm1955_vm3, %v1940_v2, %v1861_v61 }
 0x356   : > { %v1703_v22 = vpop.permute.xlu1 %1702 }
 0x357   : > { %v1925_v33 = vsel %vm1922_vm4, %v802_v38, %v1703_v22  ;;  %v1859_v18 = vpop.permute.xlu0 %1858 }
 0x358   : > { %v1958_v15 = vsel %vm1955_vm3, %v1925_v33, %v1831_v62 }
 0x359   : > { %2276 = vmatpush.xpose.msk.msra.mxu0 %vm1995_vm5, %v1958_v15 }
 0x35a   : > { %v1827_v26 = vpop.permute.xlu2 %1826 }
 0x35b   : > { %v1956_v42 = vsel %vm1955_vm3, %v1923_v45, %v1827_v26 }
 0x35e   : > { %v1863_v34 = vpop.permute.xlu1 %1862 }
 0x35f   : > { %v1974_v32 = vsel %vm1955_vm3, %v1941_v54, %v1863_v34 }
 0x360   : > { %2293 = vmatpush.xpose.msk.msra.mxu1 %vm1995_vm5, %v1974_v32 }
 0x364   : > { %2294 = vmatpush.xpose.msk.msra.mxu1 %vm1995_vm5, %v1973_v23 }
 0x366   : > { %v1829_v9 = vpop.permute.xlu1 %1828 }
 0x367   : > { %v1957_v19 = vsel %vm1955_vm3, %v1924_v35, %v1829_v9 }
 0x368   : > { %2277 = vmatpush.xpose.msk.msra.mxu0 %vm1995_vm5, %v1957_v19 }
 0x36c   : > { %2278 = vmatpush.xpose.msk.msra.mxu0 %vm1995_vm5, %v1956_v42 }
 0x36e   : > { %v1731_v5 = vpop.permute.xlu1 %1730 }
 0x36f   : > { %v1939_v52 = vsel %vm1922_vm4, %v816_v60, %v1731_v5  ;;  %2279 = vmatmul.msk.f32.vlgmr.msra.gmra.mxu0 %vm1995_vm5, %v1988_v16 }
 0x370   : > { %v1972_v12 = vsel %vm1955_vm3, %v1939_v52, %v1859_v18 }
 0x371   : > { %2295 = vmatpush.xpose.msk.msra.mxu1 %vm1995_vm5, %v1972_v12 }
 0x374   : > { %2296 = vmatmul.msk.f32.vlgmr.msra.gmra.mxu1 %vm1995_vm5, %v1988_v16 }
 0x38c   : > { %v1993_v10 = vpop.permute.xlu1 %1992 }
 0x3ec   : > { %v2112_v14 = vpop.f32.mrf.mxu0 }
 0x3ed   : > { %v2113_v48 = vadd.f32 %v2112_v14, %v1993_v10 }
 0x3ef   : > { %vm2135_vm6 = vcmp.gt.f32.partialorder %v2113_v48, 0.0  ;;  %v2137_v11 = vmul.f32 0.01, %v2113_v48 }
 0x3f1   : > { %v2139_v43 = vsel %vm2135_vm6, %v2113_v48, %v2137_v11  ;;  %v2132_v47 = vpop.f32.mrf.mxu1 }
 0x3f2   : > { %2141 = vst [vmem:[%s302_s12] sm:$0xff] %v2139_v43  ;;  %v2133_v27 = vadd.f32 %v2132_v47, %v1993_v10 }
 0x3f4   : > { %vm2136_vm7 = vcmp.gt.f32.partialorder %v2133_v27, 0.0  ;;  %v2138_v58 = vmul.f32 0.01, %v2133_v27 }
 0x3f6   : > { %v2140_v28 = vsel %vm2136_vm7, %v2133_v27, %v2138_v58 }
 0x3f7   : > { %2142 = vst [vmem:[%s302_s12 + $0x8] sm:$0xff] %v2140_v28 }
 0x3f8 PF: > { %s14_s17 = sadd.s32 1, %s2357_s17   ;;  %s4187_s15 = smov %s2353_s16 }
 0x3f9   : > { %p11_p5 = scmp.ge.s32.totalorder %s14_s17, 4   ;;  %s4188_s16 = smov %s4190_s18 }
 0x3fb   :  { %13 = sbr.rel (!%p11_p5) target bundleno = 2 (0x2), region = 72 }

</bundles_post_ra>
